<compile_context>
chip_gen: v7x
topology: tpu7x:2x2x1
jax: 0.10.0
libtpu: 0.0.40
codegen_flags: <defaults>
</compile_context>

<pallas_src>
import functools
import math

import jax
import jax.numpy as jnp
from jax.experimental import pallas as pl
from jax.experimental import pallas as pl  # noqa: F811 (kept single import path clear)
from jax.experimental.pallas import tpu as pltpu  # used when scaling: CompilerParams/vmem limits

# ---------------------------------------------------------------------------
# Small synthetic config (stands in for distilbert-base-uncased).
# ---------------------------------------------------------------------------
VOCAB = 128
MAX_POS = 32
HIDDEN = 64            # "bert_output_dim"
NUM_HEADS = 2
HEAD_DIM = HIDDEN // NUM_HEADS
FFN = 128
NUM_LAYERS = 2
MLP_HIDDEN = 100       # nn.Linear(bert_output_dim, 100)
MLP_PAD = 128          # padded to a full lane width (zero padding, exact math)
LN_EPS = 1e-12


def _layernorm(x, g, b, eps=LN_EPS):
    # One-pass variance: E[x^2] - E[x]^2 -> the two lane reductions are
    # independent (shorter serial XLU chain than mean-then-centered-mean).
    mu = jnp.mean(x, axis=-1, keepdims=True)
    ms = jnp.mean(x * x, axis=-1, keepdims=True)
    var = jnp.maximum(ms - mu * mu, 0.0)
    return (x - mu) * jax.lax.rsqrt(var + eps) * g + b


# ---------------------------------------------------------------------------
# Single fused kernel: embedding gather+LN -> NUM_LAYERS encoder layers ->
# sentiment MLP head.  Hidden state layout inside the kernel: (B*S, H), f32.
# ---------------------------------------------------------------------------
def fused_forward_kernel(ids_ref, mask_ref,
                         word_emb_ref, pos_emb_ref,
                         emb_g_ref, emb_b_ref,
                         wqkv_ref, bqkv_ref, wo_ref, bo_ref,
                         ln1_g_ref, ln1_b_ref,
                         w1_ref, b1_ref, w2_ref, b2_ref,
                         ln2_g_ref, ln2_b_ref,
                         hw1_ref, hb1_ref, hw2_ref, hb2_ref,
                         o_ref,
                         *, num_layers, num_heads, head_dim, batch, seq):
    f32 = jnp.float32
    bf16 = jnp.bfloat16
    H = num_heads * head_dim
    BS = batch * seq

    # ---- In-kernel embedding lookup (exact one-hot matmul) + positional add.
    ids = ids_ref[...]                                                  # (BS, 1) int32
    onehot = (jax.lax.broadcasted_iota(jnp.int32, (BS, VOCAB), 1) == ids).astype(f32)
    x = jnp.dot(onehot, word_emb_ref[...], preferred_element_type=f32)  # (BS, H) f32
    pos = pos_emb_ref[0:seq, :]                                         # (S, H)
    x = x + jnp.concatenate([pos] * batch, axis=0)                      # tile over batch

    h = _layernorm(x, emb_g_ref[...], emb_b_ref[...])                   # (BS, H) f32

    # ---- Additive attention-mask bias built in-kernel, hoisted out of the
    # layer loop.  Head-major slab order (hh*B + b) to match heads() below.
    neg = (1.0 - mask_ref[...].astype(f32)) * -1e9                      # (B, S)
    bias = jnp.concatenate(
        [jnp.broadcast_to(neg[b:b + 1, :], (1, seq, seq))
         for _ in range(num_heads) for b in range(batch)],
        axis=0)                                                         # (NH*B, S, S)

    for l in range(num_layers):                       # static unrolled layer loop
        xl = h                                        # (BS, H) f32 residual input

        # Fused QKV projection: one (BS, H) x (H, 3H) MXU push.
        # 1/sqrt(head_dim) is already folded into the Q columns at init time.
        qkv = jnp.dot(xl.astype(bf16), wqkv_ref[l],
                      preferred_element_type=f32) + bqkv_ref[l]         # (BS, 3H) f32
        qkv16 = qkv.astype(bf16)                      # single cast per layer

        # Re-lay q/k/v as (NH*B, S, Dh): per-head lane slice, leading-dim-only
        # reshape (BS,Dh)->(B,S,Dh), leading-axis concat over heads.
        def heads(offset):
            parts = []
            for hh in range(num_heads):
                sl = qkv16[:, offset + hh * head_dim: offset + (hh + 1) * head_dim]
                parts.append(sl.reshape(batch, seq, head_dim))
            return jnp.concatenate(parts, axis=0)      # (NH*B, S, Dh) bf16
        qh = heads(0)
        kh = heads(H)
        vh = heads(2 * H)

        # One batched score matmul + one batched masked softmax per layer.
        s = jnp.einsum('bqd,bkd->bqk', qh, kh,
                       preferred_element_type=f32)                     # (NH*B, S, S)
        s = s + bias
        s = s - jnp.max(s, axis=-1, keepdims=True)
        p = jnp.exp(s)
        p = p * pl.reciprocal(jnp.sum(p, axis=-1, keepdims=True), approx=True)
        ctx_b = jnp.einsum('bqk,bkd->bqd', p.astype(bf16), vh,
                           preferred_element_type=f32)                 # (NH*B, S, Dh)

        # Reassemble (BS, H) with a lane-axis concatenate (no VMEM scratch).
        ctx = jnp.concatenate(
            [ctx_b[hh * batch:(hh + 1) * batch].reshape(BS, head_dim)
             for hh in range(num_heads)],
            axis=-1)                                                   # (BS, H) f32

        attn = jnp.dot(ctx.astype(bf16), wo_ref[l],
                       preferred_element_type=f32) + bo_ref[l]
        h1 = _layernorm(attn + xl, ln1_g_ref[l], ln1_b_ref[l])         # sa_layer_norm

        ff = jnp.dot(h1.astype(bf16), w1_ref[l],
                     preferred_element_type=f32) + b1_ref[l]
        # TODO(synk): DistilBERT uses exact (erf) GELU; tanh approximation used here.
        ff = jax.nn.gelu(ff, approximate=True)
        ff = jnp.dot(ff.astype(bf16), w2_ref[l],
                     preferred_element_type=f32) + b2_ref[l]
        h = _layernorm(ff + h1, ln2_g_ref[l], ln2_b_ref[l])            # output_layer_norm

    # ---- Sentiment head on every token row (negligible extra FLOPs); the
    # wrapper extracts the CLS rows.  Linear(H,128pad) -> ReLU -> row-dot -> sigmoid.
    z = jnp.dot(h.astype(bf16), hw1_ref[...],
                preferred_element_type=f32) + hb1_ref[...]              # (BS, 128)
    z = jnp.maximum(z, 0.0)
    # Final (128 -> 1) projection as VPU multiply + XLU lane reduce (no N=1 MXU push).
    logit = jnp.sum(z * hw2_ref[...], axis=-1, keepdims=True) + hb2_ref[...]
    # Tiny (BS,1) masked store; lane-dense layout not worth a transpose at this size.
    o_ref[...] = jax.nn.sigmoid(logit).astype(o_ref.dtype)


def fused_forward(params, input_ids, attention_mask):
    B, S = input_ids.shape
    ids_col = input_ids.reshape(B * S, 1).astype(jnp.int32)
    kernel = functools.partial(
        fused_forward_kernel,
        num_layers=NUM_LAYERS, num_heads=NUM_HEADS, head_dim=HEAD_DIM,
        batch=B, seq=S)
    # No grid: the whole problem (16 x 64) fits in a handful of vregs; all
    # weights (~130 KB) live as whole-array VMEM inputs.  When scaling to real
    # DistilBERT, add a layer grid axis ("arbitrary") with per-layer weight
    # BlockSpecs + pltpu.CompilerParams(vmem_limit_bytes=...), and a "parallel"
    # batch axis for v7x's second TensorCore.
    return pl.pallas_call(
        kernel,
        out_shape=jax.ShapeDtypeStruct((B * S, 1), jnp.float32),
    )(ids_col, attention_mask.astype(jnp.int32),
      params['word_emb'], params['pos_emb'],
      params['emb_ln_g'], params['emb_ln_b'],
      params['wqkv'], params['bqkv'], params['wo'], params['bo'],
      params['ln1_g'], params['ln1_b'],
      params['w1'], params['b1'], params['w2'], params['b2'],
      params['ln2_g'], params['ln2_b'],
      params['head_w1'], params['head_b1'],
      params['head_w2'], params['head_b2'])


# ---------------------------------------------------------------------------
# Deterministic synthetic parameters in the fused/stacked kernel layout:
#   matmul weights bf16, biases / LayerNorm params f32, per-layer weights
#   stacked on a leading layer axis, QKV fused with the 1/sqrt(d) scale folded
#   into the Q columns, MLP hidden padded 100 -> 128, head_w2 as a (1,128) row.
# ---------------------------------------------------------------------------
def init_params(key):
    keys = iter(jax.random.split(key, 32))

    def normal(shape):
        return 0.02 * jax.random.normal(next(keys), shape, dtype=jnp.float32)

    L, H, F, P = NUM_LAYERS, HIDDEN, FFN, MLP_PAD
    inv_sqrt_d = 1.0 / math.sqrt(HEAD_DIM)

    wqkv = normal((L, H, 3 * H))
    # Fold attention scale into Q projection once at init (exact same math).
    wqkv = wqkv.at[:, :, 0:H].multiply(inv_sqrt_d)
    bqkv = jnp.zeros((L, 1, 3 * H), jnp.float32)
    bqkv = bqkv.at[:, :, 0:H].multiply(inv_sqrt_d)   # no-op for zero bias; kept for clarity

    hw1 = normal((H, MLP_HIDDEN))
    hw2 = normal((MLP_HIDDEN, 1))

    params = {
        'word_emb': normal((VOCAB, H)),
        'pos_emb': normal((MAX_POS, H)),
        'emb_ln_g': jnp.ones((1, H), jnp.float32),
        'emb_ln_b': jnp.zeros((1, H), jnp.float32),
        # encoder layers (stacked), fused + pre-scaled QKV
        'wqkv': wqkv.astype(jnp.bfloat16),
        'bqkv': bqkv,
        'wo': normal((L, H, H)).astype(jnp.bfloat16),
        'bo': jnp.zeros((L, 1, H), jnp.float32),
        'ln1_g': jnp.ones((L, 1, H), jnp.float32),
        'ln1_b': jnp.zeros((L, 1, H), jnp.float32),
        'w1': normal((L, H, F)).astype(jnp.bfloat16),
        'b1': jnp.zeros((L, 1, F), jnp.float32),
        'w2': normal((L, F, H)).astype(jnp.bfloat16),
        'b2': jnp.zeros((L, 1, H), jnp.float32),
        'ln2_g': jnp.ones((L, 1, H), jnp.float32),
        'ln2_b': jnp.zeros((L, 1, H), jnp.float32),
        # sentiment head, zero-padded 100 -> 128 (exactly equivalent math)
        'head_w1': jnp.pad(hw1, ((0, 0), (0, P - MLP_HIDDEN))).astype(jnp.bfloat16),
        'head_b1': jnp.zeros((1, P), jnp.float32),
        # (1, 128) f32 row for the VPU-mul + lane-reduce final projection.
        'head_w2': jnp.pad(hw2, ((0, P - MLP_HIDDEN), (0, 0))).T.astype(jnp.float32),
        'head_b2': jnp.zeros((1, 1), jnp.float32),
    }
    return params


# ---------------------------------------------------------------------------
# Full forward pass: everything (embedding gather, mask bias, encoder, head)
# happens inside the single fused Pallas kernel.
# ---------------------------------------------------------------------------
def bert_sentiment_forward(params, input_ids, attention_mask):
    B, S = input_ids.shape
    probs = fused_forward(params, input_ids, attention_mask)   # (B*S, 1)
    cls_probs = probs.reshape(B, S)[:, 0]                      # CLS token per sequence
    return cls_probs                                           # matches torch .squeeze()


if __name__ == "__main__":
    key = jax.random.PRNGKey(0)
    k_param, k_ids = jax.random.split(key)

    params = init_params(k_param)

    B, S = 2, 8
    input_ids = jax.random.randint(k_ids, (B, S), 0, VOCAB, dtype=jnp.int32)
    attention_mask = jnp.array([[1, 1, 1, 1, 1, 1, 1, 1],
                                [1, 1, 1, 1, 1, 0, 0, 0]], dtype=jnp.int32)

    fwd = jax.jit(bert_sentiment_forward)
    out = fwd(params, input_ids, attention_mask)
    out = jax.block_until_ready(out)
    assert out.shape == (B,)
    assert bool(jnp.all((out >= 0.0) & (out <= 1.0)))
    print("KERNEL_OK")
</pallas_src>

<mosaic_0001>
module attributes {stable_mosaic.version = 11 : i64} {
  func.func @fused_forward_kernel(%arg0: memref<16x1xi32, #tpu.memory_space<vmem>>, %arg1: memref<2x8xi32, #tpu.memory_space<vmem>>, %arg2: memref<128x64xf32, #tpu.memory_space<vmem>>, %arg3: memref<32x64xf32, #tpu.memory_space<vmem>>, %arg4: memref<1x64xf32, #tpu.memory_space<vmem>>, %arg5: memref<1x64xf32, #tpu.memory_space<vmem>>, %arg6: memref<2x64x192xbf16, #tpu.memory_space<vmem>>, %arg7: memref<2x1x192xf32, #tpu.memory_space<vmem>>, %arg8: memref<2x64x64xbf16, #tpu.memory_space<vmem>>, %arg9: memref<2x1x64xf32, #tpu.memory_space<vmem>>, %arg10: memref<2x1x64xf32, #tpu.memory_space<vmem>>, %arg11: memref<2x1x64xf32, #tpu.memory_space<vmem>>, %arg12: memref<2x64x128xbf16, #tpu.memory_space<vmem>>, %arg13: memref<2x1x128xf32, #tpu.memory_space<vmem>>, %arg14: memref<2x128x64xbf16, #tpu.memory_space<vmem>>, %arg15: memref<2x1x64xf32, #tpu.memory_space<vmem>>, %arg16: memref<2x1x64xf32, #tpu.memory_space<vmem>>, %arg17: memref<2x1x64xf32, #tpu.memory_space<vmem>>, %arg18: memref<64x128xbf16, #tpu.memory_space<vmem>>, %arg19: memref<1x128xf32, #tpu.memory_space<vmem>>, %arg20: memref<1x128xf32, #tpu.memory_space<vmem>>, %arg21: memref<1x1xf32, #tpu.memory_space<vmem>>, %arg22: memref<16x1xf32, #tpu.memory_space<vmem>>) attributes {dimension_semantics = [], scalar_prefetch = 0 : i64, scratch_operands = 0 : i64, tpu.core_type = #tpu.core_type<tc>} {
    %c0 = arith.constant 0 : index
    %c0_0 = arith.constant 0 : index
    %0 = vector.load %arg0[%c0, %c0_0] : memref<16x1xi32, #tpu.memory_space<vmem>>, vector<16x1xi32>
    %1 = tpu.iota {dimensions = array<i32: 1>} : vector<16x128xi32>
    %2 = vector.broadcast %0 : vector<16x1xi32> to vector<16x128xi32>
    %3 = arith.cmpi eq, %1, %2 : vector<16x128xi32>
    %4 = arith.extui %3 : vector<16x128xi1> to vector<16x128xi32>
    %5 = arith.sitofp %4 : vector<16x128xi32> to vector<16x128xf32>
    %c0_1 = arith.constant 0 : index
    %c0_2 = arith.constant 0 : index
    %6 = vector.load %arg2[%c0_1, %c0_2] : memref<128x64xf32, #tpu.memory_space<vmem>>, vector<128x64xf32>
    %cst = arith.constant dense<0.000000e+00> : vector<16x64xf32>
    %7 = tpu.matmul %5, %6, %cst {dimension_numbers = #tpu.dot_dimension_numbers<[1], [0], [0], [1], [0, 0, 1, 1], [], []>} : vector<16x128xf32>, vector<128x64xf32>, vector<16x64xf32> -> vector<16x64xf32>
    %c0_3 = arith.constant 0 : index
    %c0_4 = arith.constant 0 : index
    %8 = vector.load %arg3[%c0_3, %c0_4] : memref<32x64xf32, #tpu.memory_space<vmem>>, vector<8x64xf32>
    %9 = tpu.concatenate %8, %8 in 0 : vector<8x64xf32>, vector<8x64xf32> -> vector<16x64xf32>
    %10 = arith.addf %7, %9 : vector<16x64xf32>
    %c0_5 = arith.constant 0 : index
    %c0_6 = arith.constant 0 : index
    %11 = vector.load %arg4[%c0_5, %c0_6] : memref<1x64xf32, #tpu.memory_space<vmem>>, vector<1x64xf32>
    %c0_7 = arith.constant 0 : index
    %c0_8 = arith.constant 0 : index
    %12 = vector.load %arg5[%c0_7, %c0_8] : memref<1x64xf32, #tpu.memory_space<vmem>>, vector<1x64xf32>
    %cst_9 = arith.constant dense<0.000000e+00> : vector<16xf32>
    %13 = vector.multi_reduction <add>, %10, %cst_9 [1] : vector<16x64xf32> to vector<16xf32>
    %14 = vector.shape_cast %13 : vector<16xf32> to vector<16x1xf32>
    %cst_10 = arith.constant 6.400000e+01 : f32
    %15 = vector.broadcast %cst_10 : f32 to vector<16x1xf32>
    %16 = arith.divf %14, %15 : vector<16x1xf32>
    %17 = arith.mulf %10, %10 : vector<16x64xf32>
    %cst_11 = arith.constant dense<0.000000e+00> : vector<16xf32>
    %18 = vector.multi_reduction <add>, %17, %cst_11 [1] : vector<16x64xf32> to vector<16xf32>
    %19 = vector.shape_cast %18 : vector<16xf32> to vector<16x1xf32>
    %cst_12 = arith.constant 6.400000e+01 : f32
    %20 = vector.broadcast %cst_12 : f32 to vector<16x1xf32>
    %21 = arith.divf %19, %20 : vector<16x1xf32>
    %22 = arith.mulf %16, %16 : vector<16x1xf32>
    %23 = arith.subf %21, %22 : vector<16x1xf32>
    %cst_13 = arith.constant 0.000000e+00 : f32
    %24 = vector.broadcast %cst_13 : f32 to vector<16x1xf32>
    %25 = arith.maximumf %23, %24 : vector<16x1xf32>
    %26 = vector.broadcast %16 : vector<16x1xf32> to vector<16x64xf32>
    %27 = arith.subf %10, %26 : vector<16x64xf32>
    %cst_14 = arith.constant 9.99999996E-13 : f32
    %28 = vector.broadcast %cst_14 : f32 to vector<16x1xf32>
    %29 = arith.addf %25, %28 : vector<16x1xf32>
    %30 = math.rsqrt %29 : vector<16x1xf32>
    %31 = vector.broadcast %30 : vector<16x1xf32> to vector<16x64xf32>
    %32 = arith.mulf %27, %31 : vector<16x64xf32>
    %33 = vector.broadcast %11 : vector<1x64xf32> to vector<16x64xf32>
    %34 = arith.mulf %32, %33 : vector<16x64xf32>
    %35 = vector.broadcast %12 : vector<1x64xf32> to vector<16x64xf32>
    %36 = arith.addf %34, %35 : vector<16x64xf32>
    %c0_15 = arith.constant 0 : index
    %c0_16 = arith.constant 0 : index
    %37 = vector.load %arg1[%c0_15, %c0_16] : memref<2x8xi32, #tpu.memory_space<vmem>>, vector<2x8xi32>
    %38 = arith.sitofp %37 : vector<2x8xi32> to vector<2x8xf32>
    %cst_17 = arith.constant 1.000000e+00 : f32
    %39 = vector.broadcast %cst_17 : f32 to vector<2x8xf32>
    %40 = arith.subf %39, %38 : vector<2x8xf32>
    %cst_18 = arith.constant -1.000000e+09 : f32
    %41 = vector.broadcast %cst_18 : f32 to vector<2x8xf32>
    %42 = arith.mulf %40, %41 : vector<2x8xf32>
    %43 = vector.extract_strided_slice %42 {offsets = [0, 0], sizes = [1, 8], strides = [1, 1]} : vector<2x8xf32> to vector<1x8xf32>
    %44 = vector.shape_cast %43 : vector<1x8xf32> to vector<1x1x8xf32>
    %45 = vector.broadcast %44 : vector<1x1x8xf32> to vector<1x8x8xf32>
    %46 = vector.extract_strided_slice %42 {offsets = [1, 0], sizes = [1, 8], strides = [1, 1]} : vector<2x8xf32> to vector<1x8xf32>
    %47 = vector.shape_cast %46 : vector<1x8xf32> to vector<1x1x8xf32>
    %48 = vector.broadcast %47 : vector<1x1x8xf32> to vector<1x8x8xf32>
    %49 = vector.extract_strided_slice %42 {offsets = [0, 0], sizes = [1, 8], strides = [1, 1]} : vector<2x8xf32> to vector<1x8xf32>
    %50 = vector.shape_cast %49 : vector<1x8xf32> to vector<1x1x8xf32>
    %51 = vector.broadcast %50 : vector<1x1x8xf32> to vector<1x8x8xf32>
    %52 = vector.extract_strided_slice %42 {offsets = [1, 0], sizes = [1, 8], strides = [1, 1]} : vector<2x8xf32> to vector<1x8xf32>
    %53 = vector.shape_cast %52 : vector<1x8xf32> to vector<1x1x8xf32>
    %54 = vector.broadcast %53 : vector<1x1x8xf32> to vector<1x8x8xf32>
    %55 = tpu.concatenate %45, %48, %51, %54 in 0 : vector<1x8x8xf32>, vector<1x8x8xf32>, vector<1x8x8xf32>, vector<1x8x8xf32> -> vector<4x8x8xf32>
    %56 = arith.truncf %36 : vector<16x64xf32> to vector<16x64xbf16>
    %c0_19 = arith.constant 0 : index
    %c0_20 = arith.constant 0 : index
    %c0_21 = arith.constant 0 : index
    %57 = vector.load %arg6[%c0_19, %c0_20, %c0_21] : memref<2x64x192xbf16, #tpu.memory_space<vmem>>, vector<1x64x192xbf16>
    %58 = vector.shape_cast %57 : vector<1x64x192xbf16> to vector<64x192xbf16>
    %cst_22 = arith.constant dense<0.000000e+00> : vector<16x192xf32>
    %59 = tpu.matmul %56, %58, %cst_22 {dimension_numbers = #tpu.dot_dimension_numbers<[1], [0], [0], [1], [0, 0, 1, 1], [], []>} : vector<16x64xbf16>, vector<64x192xbf16>, vector<16x192xf32> -> vector<16x192xf32>
    %c0_23 = arith.constant 0 : index
    %c0_24 = arith.constant 0 : index
    %c0_25 = arith.constant 0 : index
    %60 = vector.load %arg7[%c0_23, %c0_24, %c0_25] : memref<2x1x192xf32, #tpu.memory_space<vmem>>, vector<1x1x192xf32>
    %61 = vector.shape_cast %60 : vector<1x1x192xf32> to vector<1x192xf32>
    %62 = vector.broadcast %61 : vector<1x192xf32> to vector<16x192xf32>
    %63 = arith.addf %59, %62 : vector<16x192xf32>
    %64 = arith.truncf %63 : vector<16x192xf32> to vector<16x192xbf16>
    %65 = vector.extract_strided_slice %64 {offsets = [0, 0], sizes = [16, 32], strides = [1, 1]} : vector<16x192xbf16> to vector<16x32xbf16>
    %66 = vector.shape_cast %65 : vector<16x32xbf16> to vector<2x8x32xbf16>
    %67 = vector.extract_strided_slice %64 {offsets = [0, 32], sizes = [16, 32], strides = [1, 1]} : vector<16x192xbf16> to vector<16x32xbf16>
    %68 = vector.shape_cast %67 : vector<16x32xbf16> to vector<2x8x32xbf16>
    %69 = tpu.concatenate %66, %68 in 0 : vector<2x8x32xbf16>, vector<2x8x32xbf16> -> vector<4x8x32xbf16>
    %70 = vector.extract_strided_slice %64 {offsets = [0, 64], sizes = [16, 32], strides = [1, 1]} : vector<16x192xbf16> to vector<16x32xbf16>
    %71 = vector.shape_cast %70 : vector<16x32xbf16> to vector<2x8x32xbf16>
    %72 = vector.extract_strided_slice %64 {offsets = [0, 96], sizes = [16, 32], strides = [1, 1]} : vector<16x192xbf16> to vector<16x32xbf16>
    %73 = vector.shape_cast %72 : vector<16x32xbf16> to vector<2x8x32xbf16>
    %74 = tpu.concatenate %71, %73 in 0 : vector<2x8x32xbf16>, vector<2x8x32xbf16> -> vector<4x8x32xbf16>
    %75 = vector.extract_strided_slice %64 {offsets = [0, 128], sizes = [16, 32], strides = [1, 1]} : vector<16x192xbf16> to vector<16x32xbf16>
    %76 = vector.shape_cast %75 : vector<16x32xbf16> to vector<2x8x32xbf16>
    %77 = vector.extract_strided_slice %64 {offsets = [0, 160], sizes = [16, 32], strides = [1, 1]} : vector<16x192xbf16> to vector<16x32xbf16>
    %78 = vector.shape_cast %77 : vector<16x32xbf16> to vector<2x8x32xbf16>
    %79 = tpu.concatenate %76, %78 in 0 : vector<2x8x32xbf16>, vector<2x8x32xbf16> -> vector<4x8x32xbf16>
    "tpu.trace_start"() <{level = 10 : i32, message = "bqd,bkd->bqk"}> : () -> ()
    %cst_26 = arith.constant dense<0.000000e+00> : vector<4x8x8xf32>
    %80 = tpu.matmul %69, %74, %cst_26 {dimension_numbers = #tpu.dot_dimension_numbers<[2], [2], [1], [1], [0, 0, 0, 1, 1, 1], [0], [0]>} : vector<4x8x32xbf16>, vector<4x8x32xbf16>, vector<4x8x8xf32> -> vector<4x8x8xf32>
    "tpu.trace_stop"() : () -> ()
    %81 = arith.addf %80, %55 : vector<4x8x8xf32>
    %cst_27 = arith.constant dense<0xFF800000> : vector<4x8xf32>
    %82 = vector.multi_reduction <maximumf>, %81, %cst_27 [2] : vector<4x8x8xf32> to vector<4x8xf32>
    %83 = vector.shape_cast %82 : vector<4x8xf32> to vector<4x8x1xf32>
    %84 = vector.broadcast %83 : vector<4x8x1xf32> to vector<4x8x8xf32>
    %85 = arith.subf %81, %84 : vector<4x8x8xf32>
    %86 = math.exp %85 : vector<4x8x8xf32>
    %cst_28 = arith.constant dense<0.000000e+00> : vector<4x8xf32>
    %87 = vector.multi_reduction <add>, %86, %cst_28 [2] : vector<4x8x8xf32> to vector<4x8xf32>
    %88 = vector.shape_cast %87 : vector<4x8xf32> to vector<4x8x1xf32>
    %89 = tpu.reciprocal %88 {approx = true} : vector<4x8x1xf32> -> vector<4x8x1xf32>
    %90 = vector.broadcast %89 : vector<4x8x1xf32> to vector<4x8x8xf32>
    %91 = arith.mulf %86, %90 : vector<4x8x8xf32>
    %92 = arith.truncf %91 : vector<4x8x8xf32> to vector<4x8x8xbf16>
    "tpu.trace_start"() <{level = 10 : i32, message = "bqk,bkd->bqd"}> : () -> ()
    %cst_29 = arith.constant dense<0.000000e+00> : vector<4x8x32xf32>
    %93 = tpu.matmul %92, %79, %cst_29 {dimension_numbers = #tpu.dot_dimension_numbers<[2], [1], [1], [2], [0, 0, 0, 1, 1, 2], [0], [0]>} : vector<4x8x8xbf16>, vector<4x8x32xbf16>, vector<4x8x32xf32> -> vector<4x8x32xf32>
    "tpu.trace_stop"() : () -> ()
    %94 = vector.extract_strided_slice %93 {offsets = [0, 0, 0], sizes = [2, 8, 32], strides = [1, 1, 1]} : vector<4x8x32xf32> to vector<2x8x32xf32>
    %95 = vector.shape_cast %94 : vector<2x8x32xf32> to vector<16x32xf32>
    %96 = vector.extract_strided_slice %93 {offsets = [2, 0, 0], sizes = [2, 8, 32], strides = [1, 1, 1]} : vector<4x8x32xf32> to vector<2x8x32xf32>
    %97 = vector.shape_cast %96 : vector<2x8x32xf32> to vector<16x32xf32>
    %98 = tpu.concatenate %95, %97 in 1 : vector<16x32xf32>, vector<16x32xf32> -> vector<16x64xf32>
    %99 = arith.truncf %98 : vector<16x64xf32> to vector<16x64xbf16>
    %c0_30 = arith.constant 0 : index
    %c0_31 = arith.constant 0 : index
    %c0_32 = arith.constant 0 : index
    %100 = vector.load %arg8[%c0_30, %c0_31, %c0_32] : memref<2x64x64xbf16, #tpu.memory_space<vmem>>, vector<1x64x64xbf16>
    %101 = vector.shape_cast %100 : vector<1x64x64xbf16> to vector<64x64xbf16>
    %cst_33 = arith.constant dense<0.000000e+00> : vector<16x64xf32>
    %102 = tpu.matmul %99, %101, %cst_33 {dimension_numbers = #tpu.dot_dimension_numbers<[1], [0], [0], [1], [0, 0, 1, 1], [], []>} : vector<16x64xbf16>, vector<64x64xbf16>, vector<16x64xf32> -> vector<16x64xf32>
    %c0_34 = arith.constant 0 : index
    %c0_35 = arith.constant 0 : index
    %c0_36 = arith.constant 0 : index
    %103 = vector.load %arg9[%c0_34, %c0_35, %c0_36] : memref<2x1x64xf32, #tpu.memory_space<vmem>>, vector<1x1x64xf32>
    %104 = vector.shape_cast %103 : vector<1x1x64xf32> to vector<1x64xf32>
    %105 = vector.broadcast %104 : vector<1x64xf32> to vector<16x64xf32>
    %106 = arith.addf %102, %105 : vector<16x64xf32>
    %107 = arith.addf %106, %36 : vector<16x64xf32>
    %c0_37 = arith.constant 0 : index
    %c0_38 = arith.constant 0 : index
    %c0_39 = arith.constant 0 : index
    %108 = vector.load %arg10[%c0_37, %c0_38, %c0_39] : memref<2x1x64xf32, #tpu.memory_space<vmem>>, vector<1x1x64xf32>
    %109 = vector.shape_cast %108 : vector<1x1x64xf32> to vector<1x64xf32>
    %c0_40 = arith.constant 0 : index
    %c0_41 = arith.constant 0 : index
    %c0_42 = arith.constant 0 : index
    %110 = vector.load %arg11[%c0_40, %c0_41, %c0_42] : memref<2x1x64xf32, #tpu.memory_space<vmem>>, vector<1x1x64xf32>
    %111 = vector.shape_cast %110 : vector<1x1x64xf32> to vector<1x64xf32>
    %cst_43 = arith.constant dense<0.000000e+00> : vector<16xf32>
    %112 = vector.multi_reduction <add>, %107, %cst_43 [1] : vector<16x64xf32> to vector<16xf32>
    %113 = vector.shape_cast %112 : vector<16xf32> to vector<16x1xf32>
    %cst_44 = arith.constant 6.400000e+01 : f32
    %114 = vector.broadcast %cst_44 : f32 to vector<16x1xf32>
    %115 = arith.divf %113, %114 : vector<16x1xf32>
    %116 = arith.mulf %107, %107 : vector<16x64xf32>
    %cst_45 = arith.constant dense<0.000000e+00> : vector<16xf32>
    %117 = vector.multi_reduction <add>, %116, %cst_45 [1] : vector<16x64xf32> to vector<16xf32>
    %118 = vector.shape_cast %117 : vector<16xf32> to vector<16x1xf32>
    %cst_46 = arith.constant 6.400000e+01 : f32
    %119 = vector.broadcast %cst_46 : f32 to vector<16x1xf32>
    %120 = arith.divf %118, %119 : vector<16x1xf32>
    %121 = arith.mulf %115, %115 : vector<16x1xf32>
    %122 = arith.subf %120, %121 : vector<16x1xf32>
    %cst_47 = arith.constant 0.000000e+00 : f32
    %123 = vector.broadcast %cst_47 : f32 to vector<16x1xf32>
    %124 = arith.maximumf %122, %123 : vector<16x1xf32>
    %125 = vector.broadcast %115 : vector<16x1xf32> to vector<16x64xf32>
    %126 = arith.subf %107, %125 : vector<16x64xf32>
    %cst_48 = arith.constant 9.99999996E-13 : f32
    %127 = vector.broadcast %cst_48 : f32 to vector<16x1xf32>
    %128 = arith.addf %124, %127 : vector<16x1xf32>
    %129 = math.rsqrt %128 : vector<16x1xf32>
    %130 = vector.broadcast %129 : vector<16x1xf32> to vector<16x64xf32>
    %131 = arith.mulf %126, %130 : vector<16x64xf32>
    %132 = vector.broadcast %109 : vector<1x64xf32> to vector<16x64xf32>
    %133 = arith.mulf %131, %132 : vector<16x64xf32>
    %134 = vector.broadcast %111 : vector<1x64xf32> to vector<16x64xf32>
    %135 = arith.addf %133, %134 : vector<16x64xf32>
    %136 = arith.truncf %135 : vector<16x64xf32> to vector<16x64xbf16>
    %c0_49 = arith.constant 0 : index
    %c0_50 = arith.constant 0 : index
    %c0_51 = arith.constant 0 : index
    %137 = vector.load %arg12[%c0_49, %c0_50, %c0_51] : memref<2x64x128xbf16, #tpu.memory_space<vmem>>, vector<1x64x128xbf16>
    %138 = vector.shape_cast %137 : vector<1x64x128xbf16> to vector<64x128xbf16>
    %cst_52 = arith.constant dense<0.000000e+00> : vector<16x128xf32>
    %139 = tpu.matmul %136, %138, %cst_52 {dimension_numbers = #tpu.dot_dimension_numbers<[1], [0], [0], [1], [0, 0, 1, 1], [], []>} : vector<16x64xbf16>, vector<64x128xbf16>, vector<16x128xf32> -> vector<16x128xf32>
    %c0_53 = arith.constant 0 : index
    %c0_54 = arith.constant 0 : index
    %c0_55 = arith.constant 0 : index
    %140 = vector.load %arg13[%c0_53, %c0_54, %c0_55] : memref<2x1x128xf32, #tpu.memory_space<vmem>>, vector<1x1x128xf32>
    %141 = vector.shape_cast %140 : vector<1x1x128xf32> to vector<1x128xf32>
    %142 = vector.broadcast %141 : vector<1x128xf32> to vector<16x128xf32>
    %143 = arith.addf %139, %142 : vector<16x128xf32>
    %144 = arith.mulf %143, %143 : vector<16x128xf32>
    %145 = arith.mulf %143, %144 : vector<16x128xf32>
    %cst_56 = arith.constant 4.471500e-02 : f32
    %146 = vector.broadcast %cst_56 : f32 to vector<16x128xf32>
    %147 = arith.mulf %146, %145 : vector<16x128xf32>
    %148 = arith.addf %143, %147 : vector<16x128xf32>
    %cst_57 = arith.constant 0.797884583 : f32
    %149 = vector.broadcast %cst_57 : f32 to vector<16x128xf32>
    %150 = arith.mulf %149, %148 : vector<16x128xf32>
    %151 = math.tanh %150 : vector<16x128xf32>
    %cst_58 = arith.constant 1.000000e+00 : f32
    %152 = vector.broadcast %cst_58 : f32 to vector<16x128xf32>
    %153 = arith.addf %152, %151 : vector<16x128xf32>
    %cst_59 = arith.constant 5.000000e-01 : f32
    %154 = vector.broadcast %cst_59 : f32 to vector<16x128xf32>
    %155 = arith.mulf %154, %153 : vector<16x128xf32>
    %156 = arith.mulf %143, %155 : vector<16x128xf32>
    %157 = arith.truncf %156 : vector<16x128xf32> to vector<16x128xbf16>
    %c0_60 = arith.constant 0 : index
    %c0_61 = arith.constant 0 : index
    %c0_62 = arith.constant 0 : index
    %158 = vector.load %arg14[%c0_60, %c0_61, %c0_62] : memref<2x128x64xbf16, #tpu.memory_space<vmem>>, vector<1x128x64xbf16>
    %159 = vector.shape_cast %158 : vector<1x128x64xbf16> to vector<128x64xbf16>
    %cst_63 = arith.constant dense<0.000000e+00> : vector<16x64xf32>
    %160 = tpu.matmul %157, %159, %cst_63 {dimension_numbers = #tpu.dot_dimension_numbers<[1], [0], [0], [1], [0, 0, 1, 1], [], []>} : vector<16x128xbf16>, vector<128x64xbf16>, vector<16x64xf32> -> vector<16x64xf32>
    %c0_64 = arith.constant 0 : index
    %c0_65 = arith.constant 0 : index
    %c0_66 = arith.constant 0 : index
    %161 = vector.load %arg15[%c0_64, %c0_65, %c0_66] : memref<2x1x64xf32, #tpu.memory_space<vmem>>, vector<1x1x64xf32>
    %162 = vector.shape_cast %161 : vector<1x1x64xf32> to vector<1x64xf32>
    %163 = vector.broadcast %162 : vector<1x64xf32> to vector<16x64xf32>
    %164 = arith.addf %160, %163 : vector<16x64xf32>
    %165 = arith.addf %164, %135 : vector<16x64xf32>
    %c0_67 = arith.constant 0 : index
    %c0_68 = arith.constant 0 : index
    %c0_69 = arith.constant 0 : index
    %166 = vector.load %arg16[%c0_67, %c0_68, %c0_69] : memref<2x1x64xf32, #tpu.memory_space<vmem>>, vector<1x1x64xf32>
    %167 = vector.shape_cast %166 : vector<1x1x64xf32> to vector<1x64xf32>
    %c0_70 = arith.constant 0 : index
    %c0_71 = arith.constant 0 : index
    %c0_72 = arith.constant 0 : index
    %168 = vector.load %arg17[%c0_70, %c0_71, %c0_72] : memref<2x1x64xf32, #tpu.memory_space<vmem>>, vector<1x1x64xf32>
    %169 = vector.shape_cast %168 : vector<1x1x64xf32> to vector<1x64xf32>
    %cst_73 = arith.constant dense<0.000000e+00> : vector<16xf32>
    %170 = vector.multi_reduction <add>, %165, %cst_73 [1] : vector<16x64xf32> to vector<16xf32>
    %171 = vector.shape_cast %170 : vector<16xf32> to vector<16x1xf32>
    %cst_74 = arith.constant 6.400000e+01 : f32
    %172 = vector.broadcast %cst_74 : f32 to vector<16x1xf32>
    %173 = arith.divf %171, %172 : vector<16x1xf32>
    %174 = arith.mulf %165, %165 : vector<16x64xf32>
    %cst_75 = arith.constant dense<0.000000e+00> : vector<16xf32>
    %175 = vector.multi_reduction <add>, %174, %cst_75 [1] : vector<16x64xf32> to vector<16xf32>
    %176 = vector.shape_cast %175 : vector<16xf32> to vector<16x1xf32>
    %cst_76 = arith.constant 6.400000e+01 : f32
    %177 = vector.broadcast %cst_76 : f32 to vector<16x1xf32>
    %178 = arith.divf %176, %177 : vector<16x1xf32>
    %179 = arith.mulf %173, %173 : vector<16x1xf32>
    %180 = arith.subf %178, %179 : vector<16x1xf32>
    %cst_77 = arith.constant 0.000000e+00 : f32
    %181 = vector.broadcast %cst_77 : f32 to vector<16x1xf32>
    %182 = arith.maximumf %180, %181 : vector<16x1xf32>
    %183 = vector.broadcast %173 : vector<16x1xf32> to vector<16x64xf32>
    %184 = arith.subf %165, %183 : vector<16x64xf32>
    %cst_78 = arith.constant 9.99999996E-13 : f32
    %185 = vector.broadcast %cst_78 : f32 to vector<16x1xf32>
    %186 = arith.addf %182, %185 : vector<16x1xf32>
    %187 = math.rsqrt %186 : vector<16x1xf32>
    %188 = vector.broadcast %187 : vector<16x1xf32> to vector<16x64xf32>
    %189 = arith.mulf %184, %188 : vector<16x64xf32>
    %190 = vector.broadcast %167 : vector<1x64xf32> to vector<16x64xf32>
    %191 = arith.mulf %189, %190 : vector<16x64xf32>
    %192 = vector.broadcast %169 : vector<1x64xf32> to vector<16x64xf32>
    %193 = arith.addf %191, %192 : vector<16x64xf32>
    %194 = arith.truncf %193 : vector<16x64xf32> to vector<16x64xbf16>
    %c1 = arith.constant 1 : index
    %c0_79 = arith.constant 0 : index
    %c0_80 = arith.constant 0 : index
    %195 = vector.load %arg6[%c1, %c0_79, %c0_80] : memref<2x64x192xbf16, #tpu.memory_space<vmem>>, vector<1x64x192xbf16>
    %196 = vector.shape_cast %195 : vector<1x64x192xbf16> to vector<64x192xbf16>
    %cst_81 = arith.constant dense<0.000000e+00> : vector<16x192xf32>
    %197 = tpu.matmul %194, %196, %cst_81 {dimension_numbers = #tpu.dot_dimension_numbers<[1], [0], [0], [1], [0, 0, 1, 1], [], []>} : vector<16x64xbf16>, vector<64x192xbf16>, vector<16x192xf32> -> vector<16x192xf32>
    %c1_82 = arith.constant 1 : index
    %c0_83 = arith.constant 0 : index
    %c0_84 = arith.constant 0 : index
    %198 = vector.load %arg7[%c1_82, %c0_83, %c0_84] : memref<2x1x192xf32, #tpu.memory_space<vmem>>, vector<1x1x192xf32>
    %199 = vector.shape_cast %198 : vector<1x1x192xf32> to vector<1x192xf32>
    %200 = vector.broadcast %199 : vector<1x192xf32> to vector<16x192xf32>
    %201 = arith.addf %197, %200 : vector<16x192xf32>
    %202 = arith.truncf %201 : vector<16x192xf32> to vector<16x192xbf16>
    %203 = vector.extract_strided_slice %202 {offsets = [0, 0], sizes = [16, 32], strides = [1, 1]} : vector<16x192xbf16> to vector<16x32xbf16>
    %204 = vector.shape_cast %203 : vector<16x32xbf16> to vector<2x8x32xbf16>
    %205 = vector.extract_strided_slice %202 {offsets = [0, 32], sizes = [16, 32], strides = [1, 1]} : vector<16x192xbf16> to vector<16x32xbf16>
    %206 = vector.shape_cast %205 : vector<16x32xbf16> to vector<2x8x32xbf16>
    %207 = tpu.concatenate %204, %206 in 0 : vector<2x8x32xbf16>, vector<2x8x32xbf16> -> vector<4x8x32xbf16>
    %208 = vector.extract_strided_slice %202 {offsets = [0, 64], sizes = [16, 32], strides = [1, 1]} : vector<16x192xbf16> to vector<16x32xbf16>
    %209 = vector.shape_cast %208 : vector<16x32xbf16> to vector<2x8x32xbf16>
    %210 = vector.extract_strided_slice %202 {offsets = [0, 96], sizes = [16, 32], strides = [1, 1]} : vector<16x192xbf16> to vector<16x32xbf16>
    %211 = vector.shape_cast %210 : vector<16x32xbf16> to vector<2x8x32xbf16>
    %212 = tpu.concatenate %209, %211 in 0 : vector<2x8x32xbf16>, vector<2x8x32xbf16> -> vector<4x8x32xbf16>
    %213 = vector.extract_strided_slice %202 {offsets = [0, 128], sizes = [16, 32], strides = [1, 1]} : vector<16x192xbf16> to vector<16x32xbf16>
    %214 = vector.shape_cast %213 : vector<16x32xbf16> to vector<2x8x32xbf16>
    %215 = vector.extract_strided_slice %202 {offsets = [0, 160], sizes = [16, 32], strides = [1, 1]} : vector<16x192xbf16> to vector<16x32xbf16>
    %216 = vector.shape_cast %215 : vector<16x32xbf16> to vector<2x8x32xbf16>
    %217 = tpu.concatenate %214, %216 in 0 : vector<2x8x32xbf16>, vector<2x8x32xbf16> -> vector<4x8x32xbf16>
    "tpu.trace_start"() <{level = 10 : i32, message = "bqd,bkd->bqk"}> : () -> ()
    %cst_85 = arith.constant dense<0.000000e+00> : vector<4x8x8xf32>
    %218 = tpu.matmul %207, %212, %cst_85 {dimension_numbers = #tpu.dot_dimension_numbers<[2], [2], [1], [1], [0, 0, 0, 1, 1, 1], [0], [0]>} : vector<4x8x32xbf16>, vector<4x8x32xbf16>, vector<4x8x8xf32> -> vector<4x8x8xf32>
    "tpu.trace_stop"() : () -> ()
    %219 = arith.addf %218, %55 : vector<4x8x8xf32>
    %cst_86 = arith.constant dense<0xFF800000> : vector<4x8xf32>
    %220 = vector.multi_reduction <maximumf>, %219, %cst_86 [2] : vector<4x8x8xf32> to vector<4x8xf32>
    %221 = vector.shape_cast %220 : vector<4x8xf32> to vector<4x8x1xf32>
    %222 = vector.broadcast %221 : vector<4x8x1xf32> to vector<4x8x8xf32>
    %223 = arith.subf %219, %222 : vector<4x8x8xf32>
    %224 = math.exp %223 : vector<4x8x8xf32>
    %cst_87 = arith.constant dense<0.000000e+00> : vector<4x8xf32>
    %225 = vector.multi_reduction <add>, %224, %cst_87 [2] : vector<4x8x8xf32> to vector<4x8xf32>
    %226 = vector.shape_cast %225 : vector<4x8xf32> to vector<4x8x1xf32>
    %227 = tpu.reciprocal %226 {approx = true} : vector<4x8x1xf32> -> vector<4x8x1xf32>
    %228 = vector.broadcast %227 : vector<4x8x1xf32> to vector<4x8x8xf32>
    %229 = arith.mulf %224, %228 : vector<4x8x8xf32>
    %230 = arith.truncf %229 : vector<4x8x8xf32> to vector<4x8x8xbf16>
    "tpu.trace_start"() <{level = 10 : i32, message = "bqk,bkd->bqd"}> : () -> ()
    %cst_88 = arith.constant dense<0.000000e+00> : vector<4x8x32xf32>
    %231 = tpu.matmul %230, %217, %cst_88 {dimension_numbers = #tpu.dot_dimension_numbers<[2], [1], [1], [2], [0, 0, 0, 1, 1, 2], [0], [0]>} : vector<4x8x8xbf16>, vector<4x8x32xbf16>, vector<4x8x32xf32> -> vector<4x8x32xf32>
    "tpu.trace_stop"() : () -> ()
    %232 = vector.extract_strided_slice %231 {offsets = [0, 0, 0], sizes = [2, 8, 32], strides = [1, 1, 1]} : vector<4x8x32xf32> to vector<2x8x32xf32>
    %233 = vector.shape_cast %232 : vector<2x8x32xf32> to vector<16x32xf32>
    %234 = vector.extract_strided_slice %231 {offsets = [2, 0, 0], sizes = [2, 8, 32], strides = [1, 1, 1]} : vector<4x8x32xf32> to vector<2x8x32xf32>
    %235 = vector.shape_cast %234 : vector<2x8x32xf32> to vector<16x32xf32>
    %236 = tpu.concatenate %233, %235 in 1 : vector<16x32xf32>, vector<16x32xf32> -> vector<16x64xf32>
    %237 = arith.truncf %236 : vector<16x64xf32> to vector<16x64xbf16>
    %c1_89 = arith.constant 1 : index
    %c0_90 = arith.constant 0 : index
    %c0_91 = arith.constant 0 : index
    %238 = vector.load %arg8[%c1_89, %c0_90, %c0_91] : memref<2x64x64xbf16, #tpu.memory_space<vmem>>, vector<1x64x64xbf16>
    %239 = vector.shape_cast %238 : vector<1x64x64xbf16> to vector<64x64xbf16>
    %cst_92 = arith.constant dense<0.000000e+00> : vector<16x64xf32>
    %240 = tpu.matmul %237, %239, %cst_92 {dimension_numbers = #tpu.dot_dimension_numbers<[1], [0], [0], [1], [0, 0, 1, 1], [], []>} : vector<16x64xbf16>, vector<64x64xbf16>, vector<16x64xf32> -> vector<16x64xf32>
    %c1_93 = arith.constant 1 : index
    %c0_94 = arith.constant 0 : index
    %c0_95 = arith.constant 0 : index
    %241 = vector.load %arg9[%c1_93, %c0_94, %c0_95] : memref<2x1x64xf32, #tpu.memory_space<vmem>>, vector<1x1x64xf32>
    %242 = vector.shape_cast %241 : vector<1x1x64xf32> to vector<1x64xf32>
    %243 = vector.broadcast %242 : vector<1x64xf32> to vector<16x64xf32>
    %244 = arith.addf %240, %243 : vector<16x64xf32>
    %245 = arith.addf %244, %193 : vector<16x64xf32>
    %c1_96 = arith.constant 1 : index
    %c0_97 = arith.constant 0 : index
    %c0_98 = arith.constant 0 : index
    %246 = vector.load %arg10[%c1_96, %c0_97, %c0_98] : memref<2x1x64xf32, #tpu.memory_space<vmem>>, vector<1x1x64xf32>
    %247 = vector.shape_cast %246 : vector<1x1x64xf32> to vector<1x64xf32>
    %c1_99 = arith.constant 1 : index
    %c0_100 = arith.constant 0 : index
    %c0_101 = arith.constant 0 : index
    %248 = vector.load %arg11[%c1_99, %c0_100, %c0_101] : memref<2x1x64xf32, #tpu.memory_space<vmem>>, vector<1x1x64xf32>
    %249 = vector.shape_cast %248 : vector<1x1x64xf32> to vector<1x64xf32>
    %cst_102 = arith.constant dense<0.000000e+00> : vector<16xf32>
    %250 = vector.multi_reduction <add>, %245, %cst_102 [1] : vector<16x64xf32> to vector<16xf32>
    %251 = vector.shape_cast %250 : vector<16xf32> to vector<16x1xf32>
    %cst_103 = arith.constant 6.400000e+01 : f32
    %252 = vector.broadcast %cst_103 : f32 to vector<16x1xf32>
    %253 = arith.divf %251, %252 : vector<16x1xf32>
    %254 = arith.mulf %245, %245 : vector<16x64xf32>
    %cst_104 = arith.constant dense<0.000000e+00> : vector<16xf32>
    %255 = vector.multi_reduction <add>, %254, %cst_104 [1] : vector<16x64xf32> to vector<16xf32>
    %256 = vector.shape_cast %255 : vector<16xf32> to vector<16x1xf32>
    %cst_105 = arith.constant 6.400000e+01 : f32
    %257 = vector.broadcast %cst_105 : f32 to vector<16x1xf32>
    %258 = arith.divf %256, %257 : vector<16x1xf32>
    %259 = arith.mulf %253, %253 : vector<16x1xf32>
    %260 = arith.subf %258, %259 : vector<16x1xf32>
    %cst_106 = arith.constant 0.000000e+00 : f32
    %261 = vector.broadcast %cst_106 : f32 to vector<16x1xf32>
    %262 = arith.maximumf %260, %261 : vector<16x1xf32>
    %263 = vector.broadcast %253 : vector<16x1xf32> to vector<16x64xf32>
    %264 = arith.subf %245, %263 : vector<16x64xf32>
    %cst_107 = arith.constant 9.99999996E-13 : f32
    %265 = vector.broadcast %cst_107 : f32 to vector<16x1xf32>
    %266 = arith.addf %262, %265 : vector<16x1xf32>
    %267 = math.rsqrt %266 : vector<16x1xf32>
    %268 = vector.broadcast %267 : vector<16x1xf32> to vector<16x64xf32>
    %269 = arith.mulf %264, %268 : vector<16x64xf32>
    %270 = vector.broadcast %247 : vector<1x64xf32> to vector<16x64xf32>
    %271 = arith.mulf %269, %270 : vector<16x64xf32>
    %272 = vector.broadcast %249 : vector<1x64xf32> to vector<16x64xf32>
    %273 = arith.addf %271, %272 : vector<16x64xf32>
    %274 = arith.truncf %273 : vector<16x64xf32> to vector<16x64xbf16>
    %c1_108 = arith.constant 1 : index
    %c0_109 = arith.constant 0 : index
    %c0_110 = arith.constant 0 : index
    %275 = vector.load %arg12[%c1_108, %c0_109, %c0_110] : memref<2x64x128xbf16, #tpu.memory_space<vmem>>, vector<1x64x128xbf16>
    %276 = vector.shape_cast %275 : vector<1x64x128xbf16> to vector<64x128xbf16>
    %cst_111 = arith.constant dense<0.000000e+00> : vector<16x128xf32>
    %277 = tpu.matmul %274, %276, %cst_111 {dimension_numbers = #tpu.dot_dimension_numbers<[1], [0], [0], [1], [0, 0, 1, 1], [], []>} : vector<16x64xbf16>, vector<64x128xbf16>, vector<16x128xf32> -> vector<16x128xf32>
    %c1_112 = arith.constant 1 : index
    %c0_113 = arith.constant 0 : index
    %c0_114 = arith.constant 0 : index
    %278 = vector.load %arg13[%c1_112, %c0_113, %c0_114] : memref<2x1x128xf32, #tpu.memory_space<vmem>>, vector<1x1x128xf32>
    %279 = vector.shape_cast %278 : vector<1x1x128xf32> to vector<1x128xf32>
    %280 = vector.broadcast %279 : vector<1x128xf32> to vector<16x128xf32>
    %281 = arith.addf %277, %280 : vector<16x128xf32>
    %282 = arith.mulf %281, %281 : vector<16x128xf32>
    %283 = arith.mulf %281, %282 : vector<16x128xf32>
    %cst_115 = arith.constant 4.471500e-02 : f32
    %284 = vector.broadcast %cst_115 : f32 to vector<16x128xf32>
    %285 = arith.mulf %284, %283 : vector<16x128xf32>
    %286 = arith.addf %281, %285 : vector<16x128xf32>
    %cst_116 = arith.constant 0.797884583 : f32
    %287 = vector.broadcast %cst_116 : f32 to vector<16x128xf32>
    %288 = arith.mulf %287, %286 : vector<16x128xf32>
    %289 = math.tanh %288 : vector<16x128xf32>
    %cst_117 = arith.constant 1.000000e+00 : f32
    %290 = vector.broadcast %cst_117 : f32 to vector<16x128xf32>
    %291 = arith.addf %290, %289 : vector<16x128xf32>
    %cst_118 = arith.constant 5.000000e-01 : f32
    %292 = vector.broadcast %cst_118 : f32 to vector<16x128xf32>
    %293 = arith.mulf %292, %291 : vector<16x128xf32>
    %294 = arith.mulf %281, %293 : vector<16x128xf32>
    %295 = arith.truncf %294 : vector<16x128xf32> to vector<16x128xbf16>
    %c1_119 = arith.constant 1 : index
    %c0_120 = arith.constant 0 : index
    %c0_121 = arith.constant 0 : index
    %296 = vector.load %arg14[%c1_119, %c0_120, %c0_121] : memref<2x128x64xbf16, #tpu.memory_space<vmem>>, vector<1x128x64xbf16>
    %297 = vector.shape_cast %296 : vector<1x128x64xbf16> to vector<128x64xbf16>
    %cst_122 = arith.constant dense<0.000000e+00> : vector<16x64xf32>
    %298 = tpu.matmul %295, %297, %cst_122 {dimension_numbers = #tpu.dot_dimension_numbers<[1], [0], [0], [1], [0, 0, 1, 1], [], []>} : vector<16x128xbf16>, vector<128x64xbf16>, vector<16x64xf32> -> vector<16x64xf32>
    %c1_123 = arith.constant 1 : index
    %c0_124 = arith.constant 0 : index
    %c0_125 = arith.constant 0 : index
    %299 = vector.load %arg15[%c1_123, %c0_124, %c0_125] : memref<2x1x64xf32, #tpu.memory_space<vmem>>, vector<1x1x64xf32>
    %300 = vector.shape_cast %299 : vector<1x1x64xf32> to vector<1x64xf32>
    %301 = vector.broadcast %300 : vector<1x64xf32> to vector<16x64xf32>
    %302 = arith.addf %298, %301 : vector<16x64xf32>
    %303 = arith.addf %302, %273 : vector<16x64xf32>
    %c1_126 = arith.constant 1 : index
    %c0_127 = arith.constant 0 : index
    %c0_128 = arith.constant 0 : index
    %304 = vector.load %arg16[%c1_126, %c0_127, %c0_128] : memref<2x1x64xf32, #tpu.memory_space<vmem>>, vector<1x1x64xf32>
    %305 = vector.shape_cast %304 : vector<1x1x64xf32> to vector<1x64xf32>
    %c1_129 = arith.constant 1 : index
    %c0_130 = arith.constant 0 : index
    %c0_131 = arith.constant 0 : index
    %306 = vector.load %arg17[%c1_129, %c0_130, %c0_131] : memref<2x1x64xf32, #tpu.memory_space<vmem>>, vector<1x1x64xf32>
    %307 = vector.shape_cast %306 : vector<1x1x64xf32> to vector<1x64xf32>
    %cst_132 = arith.constant dense<0.000000e+00> : vector<16xf32>
    %308 = vector.multi_reduction <add>, %303, %cst_132 [1] : vector<16x64xf32> to vector<16xf32>
    %309 = vector.shape_cast %308 : vector<16xf32> to vector<16x1xf32>
    %cst_133 = arith.constant 6.400000e+01 : f32
    %310 = vector.broadcast %cst_133 : f32 to vector<16x1xf32>
    %311 = arith.divf %309, %310 : vector<16x1xf32>
    %312 = arith.mulf %303, %303 : vector<16x64xf32>
    %cst_134 = arith.constant dense<0.000000e+00> : vector<16xf32>
    %313 = vector.multi_reduction <add>, %312, %cst_134 [1] : vector<16x64xf32> to vector<16xf32>
    %314 = vector.shape_cast %313 : vector<16xf32> to vector<16x1xf32>
    %cst_135 = arith.constant 6.400000e+01 : f32
    %315 = vector.broadcast %cst_135 : f32 to vector<16x1xf32>
    %316 = arith.divf %314, %315 : vector<16x1xf32>
    %317 = arith.mulf %311, %311 : vector<16x1xf32>
    %318 = arith.subf %316, %317 : vector<16x1xf32>
    %cst_136 = arith.constant 0.000000e+00 : f32
    %319 = vector.broadcast %cst_136 : f32 to vector<16x1xf32>
    %320 = arith.maximumf %318, %319 : vector<16x1xf32>
    %321 = vector.broadcast %311 : vector<16x1xf32> to vector<16x64xf32>
    %322 = arith.subf %303, %321 : vector<16x64xf32>
    %cst_137 = arith.constant 9.99999996E-13 : f32
    %323 = vector.broadcast %cst_137 : f32 to vector<16x1xf32>
    %324 = arith.addf %320, %323 : vector<16x1xf32>
    %325 = math.rsqrt %324 : vector<16x1xf32>
    %326 = vector.broadcast %325 : vector<16x1xf32> to vector<16x64xf32>
    %327 = arith.mulf %322, %326 : vector<16x64xf32>
    %328 = vector.broadcast %305 : vector<1x64xf32> to vector<16x64xf32>
    %329 = arith.mulf %327, %328 : vector<16x64xf32>
    %330 = vector.broadcast %307 : vector<1x64xf32> to vector<16x64xf32>
    %331 = arith.addf %329, %330 : vector<16x64xf32>
    %332 = arith.truncf %331 : vector<16x64xf32> to vector<16x64xbf16>
    %c0_138 = arith.constant 0 : index
    %c0_139 = arith.constant 0 : index
    %333 = vector.load %arg18[%c0_138, %c0_139] : memref<64x128xbf16, #tpu.memory_space<vmem>>, vector<64x128xbf16>
    %cst_140 = arith.constant dense<0.000000e+00> : vector<16x128xf32>
    %334 = tpu.matmul %332, %333, %cst_140 {dimension_numbers = #tpu.dot_dimension_numbers<[1], [0], [0], [1], [0, 0, 1, 1], [], []>} : vector<16x64xbf16>, vector<64x128xbf16>, vector<16x128xf32> -> vector<16x128xf32>
    %c0_141 = arith.constant 0 : index
    %c0_142 = arith.constant 0 : index
    %335 = vector.load %arg19[%c0_141, %c0_142] : memref<1x128xf32, #tpu.memory_space<vmem>>, vector<1x128xf32>
    %336 = vector.broadcast %335 : vector<1x128xf32> to vector<16x128xf32>
    %337 = arith.addf %334, %336 : vector<16x128xf32>
    %cst_143 = arith.constant 0.000000e+00 : f32
    %338 = vector.broadcast %cst_143 : f32 to vector<16x128xf32>
    %339 = arith.maximumf %337, %338 : vector<16x128xf32>
    %c0_144 = arith.constant 0 : index
    %c0_145 = arith.constant 0 : index
    %340 = vector.load %arg20[%c0_144, %c0_145] : memref<1x128xf32, #tpu.memory_space<vmem>>, vector<1x128xf32>
    %341 = vector.broadcast %340 : vector<1x128xf32> to vector<16x128xf32>
    %342 = arith.mulf %339, %341 : vector<16x128xf32>
    %cst_146 = arith.constant dense<0.000000e+00> : vector<16xf32>
    %343 = vector.multi_reduction <add>, %342, %cst_146 [1] : vector<16x128xf32> to vector<16xf32>
    %344 = vector.shape_cast %343 : vector<16xf32> to vector<16x1xf32>
    %c0_147 = arith.constant 0 : index
    %c0_148 = arith.constant 0 : index
    %345 = vector.load %arg21[%c0_147, %c0_148] : memref<1x1xf32, #tpu.memory_space<vmem>>, vector<1x1xf32>
    %346 = vector.broadcast %345 : vector<1x1xf32> to vector<16x1xf32>
    %347 = arith.addf %344, %346 : vector<16x1xf32>
    %348 = arith.negf %347 : vector<16x1xf32>
    %349 = math.exp %348 : vector<16x1xf32>
    %cst_149 = arith.constant 1.000000e+00 : f32
    %350 = vector.broadcast %cst_149 : f32 to vector<16x1xf32>
    %351 = arith.addf %350, %349 : vector<16x1xf32>
    %352 = arith.divf %350, %351 : vector<16x1xf32>
    %c0_150 = arith.constant 0 : index
    %c0_151 = arith.constant 0 : index
    %353 = vector.load %arg22[%c0_150, %c0_151] : memref<16x1xf32, #tpu.memory_space<vmem>>, vector<16x1xf32>
    tpu.vector_store %arg22[%c0_150, %c0_151], %352 {strides = array<i32>} : memref<16x1xf32, #tpu.memory_space<vmem>>, vector<16x1xf32>,
    return
  }
}

</mosaic_0001>

<bundles_post_ra>
// kernel: bert_sentiment_forward.1
= control target key start
LH: loop header
LB: loop body
LE: loop exit
PB: predicated region body
PF: predicated region fallthrough
CT: control target
= control target key end

     0   :  { %s3998_s0 = inlined_call_operand.vmem [shape: s32[16,1], index: 0, kind: input, shape index: {}]   ;;  %s3999_s1 = inlined_call_operand.vmem [shape: s32[2,8], index: 1, kind: input, shape index: {}]   ;;  %s4000_s2 = inlined_call_operand.vmem [shape: f32[128,64], index: 2, kind: input, shape index: {}]   ;;  %s4001_s3 = inlined_call_operand.vmem [shape: f32[32,64], index: 3, kind: input, shape index: {}]   ;;  %s4002_s4 = inlined_call_operand.hbm [shape: f32[1,64], index: 4, kind: input, shape index: {}]   ;;  %s4003_s5 = inlined_call_operand.hbm [shape: f32[1,64], index: 5, kind: input, shape index: {}]   ;;  %s4004_s6 = inlined_call_operand.vmem [shape: bf16[2,64,192], index: 6, kind: input, shape index: {}]   ;;  %s4005_s7 = inlined_call_operand.vmem [shape: f32[2,1,192], index: 7, kind: input, shape index: {}]   ;;  %s4006_s8 = inlined_call_operand.vmem [shape: bf16[2,64,64], index: 8, kind: input, shape index: {}]   ;;  %s4007_s9 = inlined_call_operand.vmem [shape: f32[2,1,64], index: 9, kind: input, shape index: {}]   ;;  %s4008_s10 = inlined_call_operand.vmem [shape: f32[2,1,64], index: 10, kind: input, shape index: {}]   ;;  %s4009_s11 = inlined_call_operand.vmem [shape: f32[2,1,64], index: 11, kind: input, shape index: {}]   ;;  %s4010_s12 = inlined_call_operand.vmem [shape: bf16[2,64,128], index: 12, kind: input, shape index: {}]   ;;  %s4011_s13 = inlined_call_operand.vmem [shape: f32[2,1,128], index: 13, kind: input, shape index: {}]   ;;  %s4012_s14 = inlined_call_operand.vmem [shape: bf16[2,128,64], index: 14, kind: input, shape index: {}]   ;;  %s4013_s15 = inlined_call_operand.hbm [shape: f32[2,1,64], index: 15, kind: input, shape index: {}]   ;;  %s4014_s16 = inlined_call_operand.hbm [shape: f32[2,1,64], index: 16, kind: input, shape index: {}]   ;;  %s4015_s17 = inlined_call_operand.hbm [shape: f32[2,1,64], index: 17, kind: input, shape index: {}]   ;;  %s4016_s18 = inlined_call_operand.vmem [shape: bf16[64,128], index: 18, kind: input, shape index: {}]   ;;  %s4017_s19 = inlined_call_operand.hbm [shape: f32[1,128], index: 19, kind: input, shape index: {}]   ;;  %s4018_s20 = inlined_call_operand.hbm [shape: f32[1,128], index: 20, kind: input, shape index: {}]   ;;  %s4019_s21 = inlined_call_operand.<no memory space> [shape: f32[1,1], index: 21, kind: input, shape index: {}]   ;;  %s4020_s22 = inlined_call_operand.vmem [shape: f32[16,1], index: 22, kind: output, shape index: {}]  }
   0x1   :  { %4026 = sst [smem:[#allocation18_spill]] %s3998_s0  ;;  %v27_v0 = vstv %s4019_s21 }
   0x2   :  { %4027 = sst [smem:[#allocation19_spill]] %s3999_s1  ;;  %28 = vst [vmem:[#allocation2] sm:$0x1] %v27_v0 }
   0x3   :  { %4028 = sst [smem:[#allocation20_spill]] %s4000_s2 }
   0x4   :  { %4029 = sst [smem:[#allocation21_spill]] %s4001_s3 }
   0x5   :  { %4030 = sst [smem:[#allocation22_spill]] %s4002_s4 }
   0x6   :  { %4031 = sst [smem:[#allocation23_spill]] %s4003_s5 }
   0x7   :  { %4032 = sst [smem:[#allocation24_spill]] %s4004_s6 }
   0x8   :  { %29 = vsyncpa [#allocation4], 0 }
   0x9   :  { %30 = vsyncpa [#allocation6], 0 }
   0xa   :  { %31 = vsyncpa [#allocation9], 0 }
   0xb   :  { %32 = vsyncpa [#allocation12], 0  ;;  %s3253_s29 = smov [#allocation5]   ;;  %s4033_s23 = sld [smem:[#allocation23_spill]] }
   0xc   :  { %s57_s30 = sshll.u32 %s3253_s29, 4  ;;  %s58_s30 = int_to_ptr.vmem [resolvable:$true] %s57_s30 }
  0x11   :  { %s3091_s1 = scalar_lea.hbm %s4033_s23, 16 }
  0x12   :  { %p3092_p0 = scmp.ne.s32.totalorder %s4033_s23, %s3091_s1  ;;  %p3095_p1 = scmp.lt.u32.totalorder %s3091_s1, %s4033_s23 }
  0x14   :  { %p3097_p2 = pnand %p3095_p1, %p3092_p0 }
  0x16   :  { %3100 = shalt.err (!%p3097_p2)
}
  0x17   :  { %s3101_s21 = scalar_lea.vmem %s58_s30, 16  ;;  %s3105_s26 = scalar_lea.vmem %s58_s30, 32 }
  0x18   :  { %p3102_p3 = scmp.ne.s32.totalorder %s58_s30, %s3101_s21  ;;  %p3106_p4 = scmp.lt.s32.totalorder %s58_s30, %s58_s30 }
  0x19   :  { %p3107_p5 = scmp.lt.s32.totalorder %s3105_s26, %s3101_s21 }
  0x1b   :  { %p3108_p6 = por %p3107_p5, %p3106_p4 }
  0x1d   :  { %p3109_p7 = pnand %p3108_p6, %p3102_p3 }
  0x1f   :  { %3112 = shalt.err (!%p3109_p7)
}
  0x20   :  { %60 = dma.hbm_to_vmem [thread:$0]  %s4033_s23, 16, %s58_s30, [#allocation6]  }
  0x21   :  { %s3254_s3 = smov [#allocation8]   ;;  %s3255_s29 = smov [#allocation11]  }
  0x22   :  { %s96_s28 = sshll.u32 %s3254_s3, 4  ;;  %s123_s4 = sshll.u32 %s3255_s29, 4  ;;  %s97_s28 = int_to_ptr.vmem [resolvable:$true] %s96_s28  ;;  %s124_s4 = int_to_ptr.vmem [resolvable:$true] %s123_s4 }
  0x23   :  { %s3113_s5 = scalar_lea.hbm %s4014_s16, 32 }
  0x24   :  { %p3114_p8 = scmp.ne.s32.totalorder %s4014_s16, %s3113_s5  ;;  %p3117_p9 = scmp.lt.u32.totalorder %s3113_s5, %s4014_s16 }
  0x26   :  { %p3119_p10 = pnand %p3117_p9, %p3114_p8 }
  0x28   :  { %3122 = shalt.err (!%p3119_p10)
}
  0x29   :  { %s3123_s30 = scalar_lea.vmem %s97_s28, 32  ;;  %p3128_p12 = scmp.lt.s32.totalorder %s97_s28, %s97_s28 }
  0x2a   :  { %p3124_p11 = scmp.ne.s32.totalorder %s97_s28, %s3123_s30  ;;  %p3129_p13 = scmp.lt.s32.totalorder %s3123_s30, %s3123_s30 }
  0x2c   :  { %p3130_p0 = por %p3129_p13, %p3128_p12 }
  0x2e   :  { %p3131_p1 = pnand %p3130_p0, %p3124_p11 }
  0x30   :  { %3134 = shalt.err (!%p3131_p1)
}
  0x31   :  { %s3256_s23 = smov 16   ;;  %s3257_s26 = smov 1  }
  0x32   :  { %102 = dma.hbm_to_vmem [thread:$0]  %s4014_s16, 32, %s97_s28, [#allocation9], %s3256_s23, %s3256_s23, %s3257_s26  }
  0x33   :  { %s3135_s0 = scalar_lea.hbm %s4017_s19, 16 }
  0x34   :  { %p3136_p2 = scmp.ne.s32.totalorder %s4017_s19, %s3135_s0  ;;  %p3139_p3 = scmp.lt.u32.totalorder %s3135_s0, %s4017_s19 }
  0x36   :  { %p3141_p4 = pnand %p3139_p3, %p3136_p2 }
  0x38   :  { %3144 = shalt.err (!%p3141_p4)
}
  0x39   :  { %s3145_s25 = scalar_lea.vmem %s124_s4, 16  ;;  %s3149_s21 = scalar_lea.vmem %s124_s4, 32 }
  0x3a   :  { %p3146_p5 = scmp.ne.s32.totalorder %s124_s4, %s3145_s25  ;;  %p3150_p6 = scmp.lt.s32.totalorder %s124_s4, %s124_s4 }
  0x3b   :  { %p3151_p7 = scmp.lt.s32.totalorder %s3149_s21, %s3145_s25 }
  0x3d   :  { %p3152_p8 = por %p3151_p7, %p3150_p6 }
  0x3f   :  { %p3153_p9 = pnand %p3152_p8, %p3146_p5 }
  0x41   :  { %3156 = shalt.err (!%p3153_p9)
}
  0x42   :  { %126 = dma.hbm_to_vmem [thread:$0]  %s4017_s19, 16, %s124_s4, [#allocation12]  }
  0x43   :  { %s3258_s30 = smov [#allocation3]   ;;  %s3259_s27 = smov [#allocation7]  }
  0x44   :  { %s47_s2 = sshll.u32 %s3258_s30, 4  ;;  %s84_s3 = sshll.u32 %s3259_s27, 4  ;;  %s48_s2 = int_to_ptr.vmem [resolvable:$true] %s47_s2  ;;  %s85_s3 = int_to_ptr.vmem [resolvable:$true] %s84_s3 }
  0x45   :  { %s4034_s1 = sld [smem:[#allocation22_spill]] }
  0x4b   :  { %s3157_s5 = scalar_lea.hbm %s4034_s1, 16 }
  0x4c   :  { %p3158_p10 = scmp.ne.s32.totalorder %s4034_s1, %s3157_s5  ;;  %p3161_p11 = scmp.lt.u32.totalorder %s3157_s5, %s4034_s1 }
  0x4e   :  { %p3163_p12 = pnand %p3161_p11, %p3158_p10 }
  0x50   :  { %3166 = shalt.err (!%p3163_p12)
}
  0x51   :  { %s3167_s19 = scalar_lea.vmem %s48_s2, 16  ;;  %s3171_s4 = scalar_lea.vmem %s48_s2, 32 }
  0x52   :  { %p3168_p13 = scmp.ne.s32.totalorder %s48_s2, %s3167_s19  ;;  %p3172_p0 = scmp.lt.s32.totalorder %s48_s2, %s48_s2 }
  0x53   :  { %p3173_p1 = scmp.lt.s32.totalorder %s3171_s4, %s3167_s19 }
  0x55   :  { %p3174_p2 = por %p3173_p1, %p3172_p0 }
  0x57   :  { %p3175_p3 = pnand %p3174_p2, %p3168_p13 }
  0x59   :  { %3178 = shalt.err (!%p3175_p3)
}
  0x5a   :  { %50 = dma.hbm_to_vmem [thread:$0]  %s4034_s1, 16, %s48_s2, [#allocation4]  }
  0x5b   :  { %s3179_s29 = scalar_lea.hbm %s4013_s15, 32 }
  0x5c   :  { %p3180_p4 = scmp.ne.s32.totalorder %s4013_s15, %s3179_s29  ;;  %p3183_p5 = scmp.lt.u32.totalorder %s3179_s29, %s4013_s15 }
  0x5e   :  { %p3185_p6 = pnand %p3183_p5, %p3180_p4 }
  0x60   :  { %3188 = shalt.err (!%p3185_p6)
}
  0x61   :  { %s3189_s25 = scalar_lea.vmem %s85_s3, 32  ;;  %p3194_p8 = scmp.lt.s32.totalorder %s85_s3, %s85_s3 }
  0x62   :  { %p3190_p7 = scmp.ne.s32.totalorder %s85_s3, %s3189_s25  ;;  %p3195_p9 = scmp.lt.s32.totalorder %s3189_s25, %s3189_s25 }
  0x64   :  { %p3196_p10 = por %p3195_p9, %p3194_p8 }
  0x66   :  { %p3197_p11 = pnand %p3196_p10, %p3190_p7 }
  0x68   :  { %3200 = shalt.err (!%p3197_p11)
}
  0x69   :  { %90 = dma.hbm_to_vmem [thread:$0]  %s4013_s15, 32, %s85_s3, [#allocation6], %s3256_s23, %s3256_s23, %s3257_s26  }
  0x6a   :  { %s3260_s21 = smov [#allocation10]   ;;  %s3261_s4 = smov [#allocation13]  }
  0x6b   :  { %s108_s19 = sshll.u32 %s3260_s21, 4  ;;  %s133_s16 = sshll.u32 %s3261_s4, 4  ;;  %s109_s19 = int_to_ptr.vmem [resolvable:$true] %s108_s19  ;;  %s134_s16 = int_to_ptr.vmem [resolvable:$true] %s133_s16 }
  0x6c   :  { %s3201_s27 = scalar_lea.hbm %s4015_s17, 32 }
  0x6d   :  { %p3202_p12 = scmp.ne.s32.totalorder %s4015_s17, %s3201_s27  ;;  %p3205_p13 = scmp.lt.u32.totalorder %s3201_s27, %s4015_s17 }
  0x6f   :  { %p3207_p0 = pnand %p3205_p13, %p3202_p12 }
  0x71   :  { %3210 = shalt.err (!%p3207_p0)
}
  0x72   :  { %s3211_s15 = scalar_lea.vmem %s109_s19, 32  ;;  %p3216_p2 = scmp.lt.s32.totalorder %s109_s19, %s109_s19 }
  0x73   :  { %p3212_p1 = scmp.ne.s32.totalorder %s109_s19, %s3211_s15  ;;  %p3217_p3 = scmp.lt.s32.totalorder %s3211_s15, %s3211_s15 }
  0x75   :  { %p3218_p4 = por %p3217_p3, %p3216_p2 }
  0x77   :  { %p3219_p5 = pnand %p3218_p4, %p3212_p1 }
  0x79   :  { %3222 = shalt.err (!%p3219_p5)
}
  0x7a   :  { %114 = dma.hbm_to_vmem [thread:$0]  %s4015_s17, 32, %s109_s19, [#allocation9], %s3256_s23, %s3256_s23, %s3257_s26  }
  0x7b   :  { %s3223_s1 = scalar_lea.hbm %s4018_s20, 16 }
  0x7c   :  { %p3224_p6 = scmp.ne.s32.totalorder %s4018_s20, %s3223_s1  ;;  %p3227_p7 = scmp.lt.u32.totalorder %s3223_s1, %s4018_s20 }
  0x7e   :  { %p3229_p8 = pnand %p3227_p7, %p3224_p6 }
  0x80   :  { %3232 = shalt.err (!%p3229_p8)
}
  0x81   :  { %s3233_s27 = scalar_lea.vmem %s134_s16, 16  ;;  %s3237_s29 = scalar_lea.vmem %s134_s16, 32 }
  0x82   :  { %p3234_p9 = scmp.ne.s32.totalorder %s134_s16, %s3233_s27  ;;  %p3238_p10 = scmp.lt.s32.totalorder %s134_s16, %s134_s16 }
  0x83   :  { %p3239_p11 = scmp.lt.s32.totalorder %s3237_s29, %s3233_s27 }
  0x85   :  { %p3240_p12 = por %p3239_p11, %p3238_p10 }
  0x87   :  { %p3241_p13 = pnand %p3240_p12, %p3234_p9 }
  0x89   :  { %3244 = shalt.err (!%p3241_p13)
}
  0x8a   :  { %136 = dma.hbm_to_vmem [thread:$0]  %s4018_s20, 16, %s134_s16, [#allocation12]  }
  0x8b   :  { %3245 = dma.done.wait [#allocation4], 16  }
  0x8c   :  { %3246 = vsyncadd [#allocation4], 4294967280 }
  0x8d   :  { %3247 = dma.done.wait [#allocation6], 48  }
  0x8e   :  { %3248 = vsyncadd [#allocation6], 4294967248 }
  0x8f   :  { %3249 = dma.done.wait [#allocation9], 64  }
  0x90   :  { %3250 = vsyncadd [#allocation9], 4294967232 }
  0x91   :  { %3251 = dma.done.wait [#allocation12], 32  }
  0x92   :  { %3252 = vsyncadd [#allocation12], 4294967264  ;;  %v3262_v1 = vmov 0   ;;  %s4035_s0 = sld [smem:[#allocation18_spill]]  ;;  %s4036_s20 = sld [smem:[#allocation20_spill]]  ;;  %v163_v28 = vlaneseq  ;;  %v3263_v31 = vmov 1.0  }
  0x93   :  { %2952 = vset.pattern.permute.xlu0 %v3262_v1  ;;  %429 = vmatprep.mubr.bf16.mxu1 %v3262_v1  ;;  %s4037_s17 = sld [smem:[#allocation21_spill]]  ;;  %vm271_vm2 = vcmask 523264   ;;  %s4038_s19 = sld [smem:[#allocation24_spill]]  ;;  %vm709_vm3 = vcmask 1043456   ;;  %vm3266_vm4 = vmmov 0   ;;  %vm462_vm5 = vcmask 261120  }
  0x94   :  { %v164_v29 = vand.u32 127, %v163_v28  ;;  %vm657_vm6 = vcmask 64512   ;;  %s3268_s1 = smov 32   ;;  %vm2404_vm7 = vcmask 7168  }
  0x98   :  { %v161_v2 = vld [vmem:[%s4035_s0] sm:$0xff]  ;;  %v178_v4 = vld [vmem:[%s4036_s20 + $0x8] sm:$0xff]  ;;  %v179_v5 = vld [vmem:[%s4036_s20 + $0x10] sm:$0xff] }
  0x99   :  { %v177_v3 = vld [vmem:[%s4036_s20] sm:$0xff]  ;;  %166 = vperm.xlu0 %2952, %v161_v2   ;;  %v180_v6 = vld [vmem:[%s4036_s20 + $0x18] sm:$0xff]  ;;  %v162_v7 = vld [vmem:[%s4035_s0 + $0x8] sm:$0xff]  ;;  %s4039_s0 = sld [smem:[#allocation19_spill]] }
  0x9a   :  { %v2904_v8 = vpack.c.bf16 %v178_v4, %v177_v3  ;;  %v2908_v9 = vpack.c.bf16 %v180_v6, %v179_v5  ;;  %v181_v10 = vld [vmem:[%s4036_s20 + $0x20] sm:$0xff]  ;;  %v182_v11 = vld [vmem:[%s4036_s20 + $0x28] sm:$0xff]  ;;  %v183_v12 = vld [vmem:[%s4036_s20 + $0x30] sm:$0xff] }
  0x9b   :  { %v184_v13 = vld [vmem:[%s4036_s20 + $0x38] sm:$0xff]  ;;  %v2912_v14 = vpack.c.bf16 %v182_v11, %v181_v10  ;;  %v185_v15 = vld [vmem:[%s4036_s20 + $0x40] sm:$0xff]  ;;  %v186_v16 = vld [vmem:[%s4036_s20 + $0x48] sm:$0xff] }
  0x9c   :  { %2905 = vmatprep.subr.bf16.mxu0 %v2904_v8  ;;  %v2916_v17 = vpack.c.bf16 %v184_v13, %v183_v12  ;;  %v187_v18 = vld [vmem:[%s4036_s20 + $0x50] sm:$0xff]  ;;  %v188_v19 = vld [vmem:[%s4036_s20 + $0x58] sm:$0xff]  ;;  %v2920_v20 = vpack.c.bf16 %v186_v16, %v185_v15  ;;  %v189_v21 = vld [vmem:[%s4036_s20 + $0x60] sm:$0xff] }
  0x9d   :  { %169 = vperm.xlu0 %2952, %v162_v7   ;;  %2907 = vmatpush3.bf16.msra.mxu0 %v2904_v8  ;;  %v190_v22 = vld [vmem:[%s4036_s20 + $0x68] sm:$0xff]  ;;  %v2924_v23 = vpack.c.bf16 %v188_v19, %v187_v18  ;;  %v191_v24 = vld [vmem:[%s4036_s20 + $0x70] sm:$0xff]  ;;  %v192_v25 = vld [vmem:[%s4036_s20 + $0x78] sm:$0xff]  ;;  %v3264_v18 = vmov 0.0   ;;  %v326_v19 = vshrl.u32 %v163_v28, 7  ;;  %s3265_s20 = smov 96  }
  0x9e   :  { %2909 = vmatprep.subr.bf16.mxu0 %v2908_v9  ;;  %v2928_v26 = vpack.c.bf16 %v190_v22, %v189_v21  ;;  %v2932_v27 = vpack.c.bf16 %v192_v25, %v191_v24  ;;  %v193_v33 = vld [vmem:[%s4037_s17] sm:$0xff]  ;;  %v2966_v46 = vld [vmem:[%s4038_s19 + $0x14] ss:$8 sps:$4 sm:$0xff]   ;;  %v2968_v47 = vld [vmem:[%s4038_s19 + $0x10] ss:$8 sps:$4 sm:$0xff]   ;;  %s3267_s17 = smov 64  }
  0x9f   :  { %v2963_v44 = vld [vmem:[%s4038_s19 + $0x4] ss:$8 sps:$4 sm:$0xff]   ;;  %v2965_v45 = vld [vmem:[%s4038_s19] ss:$8 sps:$4 sm:$0xff]   ;;  %v2972_v50 = vld [vmem:[%s4038_s19 + $0x34] ss:$8 sps:$4 sm:$0xff]  }
  0xa0   :  { %397 = vmatprep.subr.bf16.mxu1 %v2963_v44  ;;  %v2969_v48 = vld [vmem:[%s4038_s19 + $0x24] ss:$8 sps:$4 sm:$0xff]   ;;  %v2971_v49 = vld [vmem:[%s4038_s19 + $0x20] ss:$8 sps:$4 sm:$0xff]   ;;  %v2974_v51 = vld [vmem:[%s4038_s19 + $0x30] ss:$8 sps:$4 sm:$0xff]  }
  0xa1   :  { %2911 = vmatpush3.bf16.msra.mxu0 %v2908_v9  ;;  %398 = vmatpush1.bf16.msra.mxu1 %v2965_v45  ;;  %v2419_v7 = vld [vmem:[#allocation3] ss:$0 sm:$0xff]  ;;  %v2420_v13 = vld [vmem:[#allocation5] ss:$0 sm:$0xff]  ;;  %v3583_v22 = vsub.s32 1, %v326_v19 }
  0xa2   :  { %2913 = vmatprep.subr.bf16.mxu0 %v2912_v14  ;;  %399 = vmatprep.subr.bf16.mxu1 %v2966_v46  ;;  %v342_v21 = vld [vmem:[%s4005_s7] sm:$0x3] }
  0xa3   :  { %v351_v24 = vrot.slane %v342_v21, %v3583_v22 }
  0xa5   :  { %2915 = vmatpush3.bf16.msra.mxu0 %v2912_v14  ;;  %400 = vmatpush1.bf16.msra.mxu1 %v2968_v47 }
  0xa6   :  { %2917 = vmatprep.subr.bf16.mxu0 %v2916_v17  ;;  %401 = vmatprep.subr.bf16.mxu1 %v2969_v48 }
  0xa9   :  { %2919 = vmatpush3.bf16.msra.mxu0 %v2916_v17  ;;  %402 = vmatpush1.bf16.msra.mxu1 %v2971_v49 }
  0xaa   :  { %2921 = vmatprep.subr.bf16.mxu0 %v2920_v20  ;;  %403 = vmatprep.subr.bf16.mxu1 %v2972_v50 }
  0xad   :  { %2923 = vmatpush3.bf16.msra.mxu0 %v2920_v20  ;;  %404 = vmatpush1.bf16.msra.mxu1 %v2974_v51  ;;  %v3578_v20 = vsub.s32 0, %v326_v19  ;;  %v321_v51 = vld [vmem:[%s4039_s0] sm:$0x3] }
  0xae   :  { %2925 = vmatprep.subr.bf16.mxu0 %v2924_v23  ;;  %2708 = vmatprep.subr.bf16.mxu1 %v3264_v18 }
  0xb1   :  { %2927 = vmatpush3.bf16.msra.mxu0 %v2924_v23  ;;  %v347_v23 = vrot.slane %v342_v21, %v3578_v20 }
  0xb2   :  { %2929 = vmatprep.subr.bf16.mxu0 %v2928_v26 }
  0xb5   :  { %2931 = vmatpush3.bf16.msra.mxu0 %v2928_v26 }
  0xb6   :  { %2933 = vmatprep.subr.bf16.mxu0 %v2932_v27 }
  0xb9   :  { %2935 = vmatpush3.bf16.msra.mxu0 %v2932_v27 }
  0xba   :  { %2732 = vmatprep.subr.bf16.mxu0 %v3264_v18 }
 0x118   :  { %v167_v30 = vpop.permute.xlu0 %166 }
 0x119   :  { %vm171_vm0 = vcmp.eq.s32.totalorder %v164_v29, %v167_v30 }
 0x11a   :  { %2705 = vmatprep.mubr.msk.f32.mxu0 %vm171_vm0, %v3263_v31 }
 0x11c   :  { %v170_v32 = vpop.permute.xlu0 %169 }
 0x11d   :  { %vm172_vm1 = vcmp.eq.s32.totalorder %v164_v29, %v170_v32 }
 0x11e   :  { %2706 = vmatmul.mubr.msk.f32.vlgmr.msra.gmra.mrb[0].mxu0 %vm172_vm1, %v3263_v31 }
 0x11f   :  { %2734 = vmatprep.mubr.msk.bf16.mxu0 %vm3266_vm4, %v3264_v18 }
 0x1f1   :  { %v2707_v34 = vpop.f32.mrb[0].mxu0 }
 0x1f2   :  { %v266_v35 = vadd.f32 %v2707_v34, %v193_v33  ;;  %v260_v36 = vpop.f32.mrb[1].mxu0 }
 0x1f3   :  { %v261_v37 = vadd.f32 %v260_v36, %v193_v33 }
 0x1f4   :  { %v275_v38 = vsel %vm271_vm2, %v266_v35, 0.0  ;;  %v282_v42 = vmul.f32 %v266_v35, %v266_v35 }
 0x1f5   :  { %276 = vadd.xlane.f32.xlu1 %v275_v38  ;;  %v281_v39 = vmul.f32 %v261_v37, %v261_v37  ;;  %v272_v41 = vsel %vm271_vm2, %v261_v37, 0.0 }
 0x1f6   :  { %v286_v43 = vsel %vm271_vm2, %v282_v42, 0.0 }
 0x1f7   :  { %v283_v40 = vsel %vm271_vm2, %v281_v39, 0.0 }
 0x1f8   :  { %284 = vadd.xlane.f32.xlu0 %v283_v40 }
 0x1f9   :  { %273 = vadd.xlane.f32.xlu1 %v272_v41 }
 0x1fd   :  { %287 = vadd.xlane.f32.xlu1 %v286_v43 }
 0x282   :  { %v277_v52 = vpop.xlane.xlu1 %276 }
 0x283   :  { %v280_v55 = vmul.f32 0.015625, %v277_v52  ;;  %v322_v52 = vcvt.s32.f32 %v321_v51 }
 0x285   :  { %v285_v53 = vpop.xlane.xlu0 %284  ;;  %v292_v60 = vmul.f32 %v280_v55, %v280_v55  ;;  %v298_v8 = vsub.f32 %v266_v35, %v280_v55 }
 0x286   :  { %v274_v54 = vpop.xlane.xlu1 %273  ;;  %v289_v57 = vmul.f32 0.015625, %v285_v53  ;;  %v323_v53 = vsub.f32 1.0, %v322_v52 }
 0x287   :  { %v279_v56 = vmul.f32 0.015625, %v274_v54 }
 0x288   :  { %v324_v54 = vmul.f32 -1e+09, %v323_v53 }
 0x289   :  { %v291_v58 = vmul.f32 %v279_v56, %v279_v56  ;;  %v297_v5 = vsub.f32 %v261_v37, %v279_v56 }
 0x28a   :  { %v288_v59 = vpop.xlane.xlu1 %287  ;;  %v3631_v55 = vrot.slane %v324_v54, %v3578_v20 }
 0x28b   :  { %v293_v61 = vsub.f32 %v289_v57, %v291_v58  ;;  %v290_v62 = vmul.f32 0.015625, %v288_v59 }
 0x28d   :  { %v295_v63 = vmax.f32 %v293_v61, 0.0  ;;  %v294_v0 = vsub.f32 %v290_v62, %v292_v60  ;;  %v3636_v62 = vrot.slane %v324_v54, %v3583_v22 }
 0x28f   :  { %v299_v2 = vadd.f32 1e-12, %v295_v63  ;;  %v296_v3 = vmax.f32 %v294_v0, 0.0 }
 0x291   :  { %3023 = vrsqrt.f32 %v299_v2  ;;  %v300_v4 = vadd.f32 1e-12, %v296_v3 }
 0x293   :  { %3025 = vrsqrt.f32 %v300_v4 }
 0x29b   :  { %v3024_v6 = vpop.eup %3023 }
 0x29c   :  { %v303_v9 = vmul.f32 %v3024_v6, %v297_v5 }
 0x29d   :  { %v3026_v10 = vpop.eup %3025 }
 0x29e   :  { %v311_v11 = vmul.f32 %v2419_v7, %v303_v9  ;;  %v304_v12 = vmul.f32 %v3026_v10, %v298_v8 }
 0x2a0   :  { %v312_v14 = vmul.f32 %v2419_v7, %v304_v12  ;;  %v3568_v15 = vadd.f32 %v2420_v13, %v311_v11 }
 0x2a2   :  { %v3570_v16 = vadd.f32 %v2420_v13, %v312_v14 }
 0x2a4   :  { %v333_v17 = vpack.c.bf16 %v3570_v16, %v3568_v15 }
 0x2a6   :  { %2429 = vmatmul.mubr.msk.bf16.vlgmr.msra.gmra.mrb[0].mxu1 %vm271_vm2, %v333_v17 }
 0x2a7   :  { %2710 = vmatprep.mubr.msk.bf16.mxu1 %vm3266_vm4, %v3264_v18 }
 0x379   :  { %v431_v25 = vpop.f32.mrb[0].mxu1 }
 0x37a   :  { %v432_v26 = vadd.f32 %v431_v25, %v347_v23  ;;  %v433_v27 = vpop.f32.mrb[1].mxu1 }
 0x37b   :  { %v434_v29 = vadd.f32 %v433_v27, %v351_v24  ;;  %v435_v30 = vpop.f32.mrb[2].mxu1 }
 0x37c   :  { %v2572_v31 = vpack.c.bf16 %v432_v26, %v432_v26  ;;  %v436_v28 = vadd.f32 %v435_v30, %v347_v23  ;;  %v437_v32 = vpop.f32.mrb[3].mxu1 }
 0x37d   :  { %v3587_v33 = vpack.c.bf16 %v434_v29, %v434_v29  ;;  %v438_v34 = vadd.f32 %v437_v32, %v351_v24 }
 0x37e   :  { %447 = vrot.lane.b32.xlu1 %v2572_v31, %s3265_s20  ;;  %v2573_v36 = vpack.c.bf16 %v436_v28, %v436_v28 }
 0x37f   :  { %v711_v35 = vsel %vm709_vm3, %v3587_v33, 0  ;;  %v3619_v49 = vpack.c.bf16 %v438_v34, %v438_v34 }
 0x380   :  { %2733 = vmatpush3.bf16.msra.mxu0 %v711_v35 }
 0x381   :  { %2744 = vmatprep.subr.bf16.mxu0 %v3264_v18  ;;  %v757_v50 = vsel %vm709_vm3, %v3619_v49, 0 }
 0x382   :  { %449 = vrot.lane.b32.xlu1 %v2573_v36, %s3265_s20 }
 0x386   :  { %460 = vrot.lane.b32.xlu1 %v2572_v31, %s3267_s17 }
 0x38a   :  { %509 = vrot.lane.b32.xlu1 %v2573_v36, %s3267_s17 }
 0x3f0   :  { %v448_v37 = vpop.permute.xlu1 %447 }
 0x3f1   :  { %v2436_v38 = vcombine.low %v448_v37, %v448_v37 }
 0x3f3   :  { %559 = vrot.lane.b32.xlu0 %v2436_v38, %s3267_s17 }
 0x3f4   :  { %v450_v39 = vpop.permute.xlu1 %449 }
 0x3f5   :  { %v2438_v40 = vcombine.low %v450_v39, %v450_v39 }
 0x3f7   :  { %609 = vrot.lane.b32.xlu1 %v2438_v40, %s3267_s17 }
 0x3f8   :  { %v461_v41 = vpop.permute.xlu1 %460 }
 0x3f9   :  { %v467_v42 = vsel %vm462_vm5, %v461_v41, 0 }
 0x3fa   :  { %2709 = vmatpush3.bf16.xpose.msra.mxu1 %v467_v42 }
 0x3fb   :  { %2714 = vmatprep.subr.bf16.mxu1 %v3264_v18 }
 0x3fc   :  { %v510_v43 = vpop.permute.xlu1 %509 }
 0x3fd   :  { %v515_v44 = vsel %vm462_vm5, %v510_v43, 0 }
 0x401   :  { %2711 = vmatmul.mubr.msk.bf16.vlgmr.msra.gmra.mrb[4].mxu1 %vm462_vm5, %v2572_v31 }
 0x402   :  { %2715 = vmatpush3.bf16.xpose.msra.mxu1 %v515_v44  ;;  %2716 = vmatprep.mubr.msk.bf16.mxu1 %vm3266_vm4, %v3264_v18 }
 0x403   :  { %2720 = vmatprep.subr.bf16.mxu1 %v3264_v18 }
 0x409   :  { %2717 = vmatmul.mubr.msk.bf16.vlgmr.msra.gmra.mrb[8].mxu1 %vm462_vm5, %v2573_v36 }
 0x40a   :  { %2722 = vmatprep.mubr.msk.bf16.mxu1 %vm3266_vm4, %v3264_v18 }
 0x465   :  { %v560_v45 = vpop.permute.xlu0 %559 }
 0x466   :  { %v565_v46 = vsel %vm462_vm5, %v560_v45, 0 }
 0x467   :  { %2721 = vmatpush3.bf16.xpose.msra.mxu1 %v565_v46 }
 0x468   :  { %2726 = vmatprep.subr.bf16.mxu1 %v3264_v18 }
 0x469   :  { %v610_v47 = vpop.permute.xlu1 %609 }
 0x46a   :  { %v615_v48 = vsel %vm462_vm5, %v610_v47, 0 }
 0x46e   :  { %2723 = vmatmul.mubr.msk.bf16.vlgmr.msra.gmra.mrb[12].mxu1 %vm462_vm5, %v448_v37 }
 0x46f   :  { %2727 = vmatpush3.bf16.xpose.msra.mxu1 %v615_v48  ;;  %2728 = vmatprep.mubr.msk.bf16.mxu1 %vm3266_vm4, %v3264_v18 }
 0x470   :  { %2738 = vmatprep.subr.bf16.mxu1 %v3264_v18 }
 0x476   :  { %2729 = vmatmul.mubr.msk.bf16.vlgmr.msra.gmra.mrb[16].mxu1 %vm462_vm5, %v450_v39 }
 0x477   :  { %2739 = vmatpush3.bf16.msra.mxu1 %v757_v50  ;;  %2740 = vmatprep.mubr.msk.bf16.mxu1 %vm3266_vm4, %v3264_v18 }
 0x478   :  { %2750 = vmatprep.subr.bf16.mxu1 %v3264_v18 }
 0x4d4   :  { %v503_v56 = vpop.f32.mrb[4].mxu1 }
 0x4d5   :  { %v504_v57 = vadd.f32 %v503_v56, %v3631_v55  ;;  %v2712_v58 = vpop.f32.mrb[5].mxu1 }
 0x4d6   :  { %v506_v59 = vpop.f32.mrb[6].mxu1 }
 0x4d7   :  { %v2713_v60 = vpop.f32.mrb[7].mxu1  ;;  %v658_v61 = vsel %vm657_vm6, %v504_v57, -inf }
 0x4d8   :  { %659 = vmax.xlane.f32.xlu1 %v658_v61 }
 0x4dc   :  { %v551_v63 = vpop.f32.mrb[8].mxu1 }
 0x4dd   :  { %v552_v0 = vadd.f32 %v551_v63, %v3636_v62  ;;  %v2718_v2 = vpop.f32.mrb[9].mxu1 }
 0x4de   :  { %v554_v3 = vpop.f32.mrb[10].mxu1  ;;  %v2975_v2 = vld [vmem:[%s4006_s8] sm:$0xff]  }
 0x4df   :  { %v2719_v4 = vpop.f32.mrb[11].mxu1  ;;  %v661_v5 = vsel %vm657_vm6, %v552_v0, -inf  ;;  %v2976_v3 = vld [vmem:[%s4006_s8 + $0x8] sm:$0xff]  }
 0x4e0   :  { %662 = vmax.xlane.f32.xlu0 %v661_v5  ;;  %v2977_v4 = vld [vmem:[%s4006_s8 + $0x10] sm:$0xff]  }
 0x541   :  { %v601_v6 = vpop.f32.mrb[12].mxu1 }
 0x542   :  { %v602_v7 = vadd.f32 %v601_v6, %v3631_v55  ;;  %v2724_v8 = vpop.f32.mrb[13].mxu1 }
 0x543   :  { %v604_v9 = vpop.f32.mrb[14].mxu1 }
 0x544   :  { %v2725_v10 = vpop.f32.mrb[15].mxu1  ;;  %v664_v11 = vsel %vm657_vm6, %v602_v7, -inf }
 0x545   :  { %665 = vmax.xlane.f32.xlu1 %v664_v11 }
 0x549   :  { %v651_v12 = vpop.f32.mrb[16].mxu1 }
 0x54a   :  { %v652_v13 = vadd.f32 %v651_v12, %v3636_v62  ;;  %v2730_v14 = vpop.f32.mrb[17].mxu1 }
 0x54b   :  { %v654_v17 = vpop.f32.mrb[18].mxu1 }
 0x54c   :  { %v2731_v19 = vpop.f32.mrb[19].mxu1  ;;  %v667_v21 = vsel %vm657_vm6, %v652_v13, -inf }
 0x54d   :  { %668 = vmax.xlane.f32.xlu1 %v667_v21 }
 0x565   :  { %v660_v23 = vpop.xlane.xlu1 %659 }
 0x566   :  { %v670_v24 = vsub.f32 %v504_v57, %v660_v23 }
 0x568   :  { %v674_v25 = vmul.f32 1.442695, %v670_v24 }
 0x56a   :  { %3027 = vpow2.f32 %v674_v25 }
 0x56d   :  { %v663_v26 = vpop.xlane.xlu0 %662 }
 0x56e   :  { %v671_v27 = vsub.f32 %v552_v0, %v663_v26 }
 0x570   :  { %v676_v29 = vmul.f32 1.442695, %v671_v27 }
 0x572   :  { %3029 = vpow2.f32 %v676_v29 }
 0x574   :  { %v3028_v30 = vpop.eup %3027 }
 0x575   :  { %v682_v31 = vsel %vm657_vm6, %v3028_v30, 0.0 }
 0x576   :  { %683 = vadd.xlane.f32.xlu1 %v682_v31 }
 0x57c   :  { %v3030_v28 = vpop.eup %3029 }
 0x57d   :  { %v685_v32 = vsel %vm657_vm6, %v3030_v28, 0.0 }
 0x57e   :  { %686 = vadd.xlane.f32.xlu0 %v685_v32 }
 0x5d2   :  { %v666_v34 = vpop.xlane.xlu1 %665 }
 0x5d3   :  { %v672_v35 = vsub.f32 %v602_v7, %v666_v34 }
 0x5d5   :  { %v678_v36 = vmul.f32 1.442695, %v672_v35  ;;  %v2444_v35 = vld [vmem:[%s4007_s9] ss:$0 sm:$0xff] }
 0x5d7   :  { %3031 = vpow2.f32 %v678_v36 }
 0x5da   :  { %v669_v37 = vpop.xlane.xlu1 %668 }
 0x5db   :  { %v673_v38 = vsub.f32 %v652_v13, %v669_v37  ;;  %v2978_v13 = vld [vmem:[%s4006_s8 + $0x18] sm:$0xff]  }
 0x5dd   :  { %v680_v39 = vmul.f32 1.442695, %v673_v38 }
 0x5df   :  { %3033 = vpow2.f32 %v680_v39 }
 0x5e1   :  { %v3032_v40 = vpop.eup %3031 }
 0x5e2   :  { %v688_v41 = vsel %vm657_vm6, %v3032_v40, 0.0 }
 0x5e3   :  { %689 = vadd.xlane.f32.xlu1 %v688_v41 }
 0x5e9   :  { %v3034_v42 = vpop.eup %3033 }
 0x5ea   :  { %v691_v43 = vsel %vm657_vm6, %v3034_v42, 0.0 }
 0x5eb   :  { %692 = vadd.xlane.f32.xlu0 %v691_v43 }
 0x5f4   :  { %456 = vrot.lane.b32.xlu1 %v3587_v33, %s3265_s20 }
 0x601   :  { %458 = vrot.lane.b32.xlu0 %v3619_v49, %s3265_s20 }
 0x603   :  { %v684_v44 = vpop.xlane.xlu1 %683 }
 0x604   :  { %3035 = vrcp.f32 %v684_v44 }
 0x60b   :  { %v687_v45 = vpop.xlane.xlu0 %686 }
 0x60c   :  { %3037 = vrcp.f32 %v687_v45 }
 0x60e   :  { %v3036_v46 = vpop.eup %3035 }
 0x60f   :  { %v698_v47 = vmul.f32 %v3036_v46, %v3028_v30 }
 0x611   :  { %v702_v48 = vpack.c.bf16 %v698_v47, %v698_v47 }
 0x613   :  { %2735 = vmatmul.mubr.msk.bf16.vlgmr.msra.gmra.mrb[4].mxu0 %vm657_vm6, %v702_v48 }
 0x614   :  { %2746 = vmatprep.mubr.msk.bf16.mxu0 %vm3266_vm4, %v3264_v18 }
 0x616   :  { %v3038_v50 = vpop.eup %3037 }
 0x617   :  { %v699_v51 = vmul.f32 %v3038_v50, %v3030_v28 }
 0x619   :  { %v703_v52 = vpack.c.bf16 %v699_v51, %v699_v51  ;;  %v2981_v51 = vld [vmem:[%s4010_s12 + $0x10] sm:$0xff]  }
 0x61b   :  { %2741 = vmatmul.mubr.msk.bf16.vlgmr.msra.gmra.mrb[20].mxu1 %vm657_vm6, %v703_v52  ;;  %v2982_v52 = vld [vmem:[%s4010_s12 + $0x18] sm:$0xff]  }
 0x61c   :  { %2752 = vmatprep.mubr.msk.bf16.mxu1 %vm3266_vm4, %v3264_v18 }
 0x670   :  { %v690_v33 = vpop.xlane.xlu1 %689 }
 0x671   :  { %3039 = vrcp.f32 %v690_v33 }
 0x674   :  { %v457_v49 = vpop.permute.xlu1 %456 }
 0x675   :  { %v803_v53 = vsel %vm709_vm3, %v457_v49, 0 }
 0x676   :  { %2745 = vmatpush3.bf16.msra.mxu0 %v803_v53 }
 0x677   :  { %2756 = vmatprep.subr.bf16.mxu0 %v3264_v18 }
 0x678   :  { %v693_v54 = vpop.xlane.xlu0 %692 }
 0x679   :  { %3041 = vrcp.f32 %v693_v54 }
 0x67b   :  { %v3040_v56 = vpop.eup %3039 }
 0x67c   :  { %v700_v57 = vmul.f32 %v3040_v56, %v3032_v40  ;;  %v459_v58 = vpop.permute.xlu0 %458 }
 0x67d   :  { %v849_v59 = vsel %vm709_vm3, %v459_v58, 0 }
 0x67e   :  { %2751 = vmatpush3.bf16.msra.mxu1 %v849_v59  ;;  %v704_v60 = vpack.c.bf16 %v700_v57, %v700_v57 }
 0x67f   :  { %2768 = vmatprep.subr.bf16.mxu1 %v3264_v18 }
 0x680   :  { %2747 = vmatmul.mubr.msk.bf16.vlgmr.msra.gmra.mrb[8].mxu0 %vm657_vm6, %v704_v60 }
 0x681   :  { %2764 = vmatprep.mubr.msk.bf16.mxu0 %vm3266_vm4, %v3264_v18  ;;  %2757 = vmatpush3.bf16.msra.mxu0 %v2975_v2 }
 0x682   :  { %2758 = vmatprep.subr.bf16.mxu0 %v3264_v18 }
 0x683   :  { %v3042_v61 = vpop.eup %3041 }
 0x684   :  { %v701_v63 = vmul.f32 %v3042_v61, %v3034_v42 }
 0x685   :  { %2759 = vmatpush3.bf16.msra.mxu0 %v2976_v3 }
 0x686   :  { %v705_v0 = vpack.c.bf16 %v701_v63, %v701_v63  ;;  %2760 = vmatprep.subr.bf16.mxu0 %v3264_v18 }
 0x688   :  { %2753 = vmatmul.mubr.msk.bf16.vlgmr.msra.gmra.mrb[24].mxu1 %vm657_vm6, %v705_v0 }
 0x689   :  { %2776 = vmatprep.mubr.msk.bf16.mxu1 %vm3266_vm4, %v3264_v18  ;;  %2761 = vmatpush3.bf16.msra.mxu0 %v2977_v4 }
 0x68a   :  { %2762 = vmatprep.subr.bf16.mxu0 %v3264_v18 }
 0x68d   :  { %2763 = vmatpush3.bf16.msra.mxu0 %v2978_v13 }
 0x68e   :  { %2780 = vmatprep.subr.bf16.mxu0 %v3264_v18 }
 0x6e6   :  { %v747_v5 = vpop.f32.mrb[4].mxu0 }
 0x6e7   :  { %v2736_v6 = vpop.f32.mrb[5].mxu0 }
 0x6e8   :  { %v750_v7 = vpop.f32.mrb[6].mxu0 }
 0x6e9   :  { %v2737_v8 = vpop.f32.mrb[7].mxu0 }
 0x6ea   :  { %v2450_v8 = vld [vmem:[%s4008_s10] ss:$0 sm:$0xff] }
 0x6ee   :  { %v793_v9 = vpop.f32.mrb[20].mxu1 }
 0x6ef   :  { %v2742_v10 = vpop.f32.mrb[21].mxu1 }
 0x6f0   :  { %v796_v11 = vpop.f32.mrb[22].mxu1 }
 0x6f1   :  { %v2743_v12 = vpop.f32.mrb[23].mxu1 }
 0x753   :  { %v839_v14 = vpop.f32.mrb[8].mxu0 }
 0x754   :  { %v2748_v17 = vpop.f32.mrb[9].mxu0 }
 0x755   :  { %v842_v19 = vpop.f32.mrb[10].mxu0 }
 0x756   :  { %v2749_v21 = vpop.f32.mrb[11].mxu0 }
 0x75b   :  { %v885_v23 = vpop.f32.mrb[24].mxu1 }
 0x75c   :  { %v2953_v24 = vpack.i.bf16 %v885_v23, %v839_v14  ;;  %v2754_v25 = vpop.f32.mrb[25].mxu1  ;;  %v2451_v14 = vld [vmem:[%s4009_s11] ss:$0 sm:$0xff] }
 0x75d   :  { %v888_v26 = vpop.f32.mrb[26].mxu1  ;;  %v2984_v25 = vld [vmem:[%s4012_s14 + $0x8] sm:$0xff]  }
 0x75e   :  { %v2755_v27 = vpop.f32.mrb[27].mxu1  ;;  %2954 = vrot.lane.b32.xlu1 %v2953_v24, %s3268_s1  ;;  %v2983_v24 = vld [vmem:[%s4012_s14] sm:$0xff]   ;;  %v2985_v26 = vld [vmem:[%s4012_s14 + $0x10] sm:$0xff]  }
 0x75f   :  { %v2987_v27 = vld [vmem:[%s4012_s14 + $0x20] sm:$0xff]  }
 0x7d0   :  { %v2955_v29 = vpop.permute.xlu1 %2954 }
 0x7d1   :  { %v2957_v30 = vunpack.i.h.bf16 %v2955_v29  ;;  %v2956_v31 = vunpack.i.l.bf16 %v2955_v29  ;;  %v2988_v29 = vld [vmem:[%s4012_s14 + $0x28] sm:$0xff]  }
 0x7d3   :  { %v900_v28 = vsel %vm462_vm5, %v793_v9, %v2957_v30  ;;  %v899_v32 = vsel %vm462_vm5, %v747_v5, %v2956_v31  ;;  %v2989_v30 = vld [vmem:[%s4012_s14 + $0x30] sm:$0xff]   ;;  %v2990_v31 = vld [vmem:[%s4012_s14 + $0x38] sm:$0xff]  }
 0x7d4   :  { %v901_v34 = vpack.c.bf16 %v900_v28, %v899_v32  ;;  %v2452_v28 = vld [vmem:[%s4011_s13] ss:$0 sm:$0xff] }
 0x7d6   :  { %2765 = vmatmul.mubr.msk.bf16.vlgmr.msra.gmra.mrb[12].mxu0 %vm271_vm2, %v901_v34 }
 0x7d7   :  { %2796 = vmatprep.mubr.msk.bf16.mxu0 %vm3266_vm4, %v3264_v18  ;;  %2781 = vmatpush3.bf16.msra.mxu0 %v2983_v24 }
 0x7d8   :  { %2782 = vmatprep.subr.bf16.mxu0 %v3264_v18 }
 0x7db   :  { %2783 = vmatpush3.bf16.msra.mxu0 %v2984_v25 }
 0x7dc   :  { %2784 = vmatprep.subr.bf16.mxu0 %v3264_v18 }
 0x7df   :  { %2785 = vmatpush3.bf16.msra.mxu0 %v2985_v26 }
 0x7e0   :  { %2786 = vmatprep.subr.bf16.mxu0 %v3264_v18 }
 0x8a9   :  { %v978_v36 = vpop.f32.mrb[12].mxu0 }
 0x8aa   :  { %v979_v37 = vadd.f32 %v2444_v35, %v978_v36  ;;  %v2766_v38 = vpop.f32.mrb[13].mxu0 }
 0x8ab   :  { %v981_v39 = vpop.f32.mrb[14].mxu0 }
 0x8ac   :  { %v985_v40 = vadd.f32 %v979_v37, %v3568_v15  ;;  %v982_v41 = vadd.f32 %v2444_v35, %v981_v39  ;;  %v2767_v42 = vpop.f32.mrb[15].mxu0  ;;  %v2979_v15 = vld [vmem:[%s4010_s12] sm:$0xff]  }
 0x8ad   :  { %2769 = vmatpush3.bf16.msra.mxu1 %v2979_v15 }
 0x8ae   :  { %v986_v43 = vadd.f32 %v982_v41, %v3570_v16  ;;  %v989_v44 = vsel %vm271_vm2, %v985_v40, 0.0  ;;  %v997_v47 = vmul.f32 %v985_v40, %v985_v40  ;;  %2770 = vmatprep.subr.bf16.mxu1 %v3264_v18  ;;  %v2980_v16 = vld [vmem:[%s4010_s12 + $0x8] sm:$0xff]  }
 0x8af   :  { %990 = vadd.xlane.f32.xlu1 %v989_v44 }
 0x8b0   :  { %v992_v45 = vsel %vm271_vm2, %v986_v43, 0.0  ;;  %v998_v46 = vmul.f32 %v986_v43, %v986_v43  ;;  %v999_v50 = vsel %vm271_vm2, %v997_v47, 0.0 }
 0x8b1   :  { %993 = vadd.xlane.f32.xlu0 %v992_v45  ;;  %2771 = vmatpush3.bf16.msra.mxu1 %v2980_v16 }
 0x8b2   :  { %v1002_v48 = vsel %vm271_vm2, %v998_v46, 0.0  ;;  %2772 = vmatprep.subr.bf16.mxu1 %v3264_v18 }
 0x8b3   :  { %1003 = vadd.xlane.f32.xlu1 %v1002_v48 }
 0x8b5   :  { %1000 = vadd.xlane.f32.xlu0 %v999_v50  ;;  %2773 = vmatpush3.bf16.msra.mxu1 %v2981_v51 }
 0x8b6   :  { %2774 = vmatprep.subr.bf16.mxu1 %v3264_v18 }
 0x8b9   :  { %2775 = vmatpush3.bf16.msra.mxu1 %v2982_v52 }
 0x93c   :  { %v991_v33 = vpop.xlane.xlu1 %990 }
 0x93d   :  { %v995_v53 = vmul.f32 0.015625, %v991_v33 }
 0x93e   :  { %v994_v49 = vpop.xlane.xlu0 %993 }
 0x93f   :  { %v996_v54 = vmul.f32 0.015625, %v994_v49  ;;  %v1007_v60 = vmul.f32 %v995_v53, %v995_v53  ;;  %v1013_v9 = vsub.f32 %v985_v40, %v995_v53 }
 0x940   :  { %v1004_v56 = vpop.xlane.xlu1 %1003 }
 0x941   :  { %v1008_v57 = vmul.f32 %v996_v54, %v996_v54  ;;  %v1006_v58 = vmul.f32 0.015625, %v1004_v56  ;;  %v1014_v6 = vsub.f32 %v986_v43, %v996_v54  ;;  %v2458_v56 = vld [vmem:[#allocation7] ss:$0 sm:$0xff] }
 0x942   :  { %v1001_v59 = vpop.xlane.xlu0 %1000 }
 0x943   :  { %v1010_v61 = vsub.f32 %v1006_v58, %v1008_v57  ;;  %v1005_v63 = vmul.f32 0.015625, %v1001_v59 }
 0x945   :  { %v1012_v0 = vmax.f32 %v1010_v61, 0.0  ;;  %v1009_v2 = vsub.f32 %v1005_v63, %v1007_v60 }
 0x947   :  { %v1016_v3 = vadd.f32 1e-12, %v1012_v0  ;;  %v1011_v4 = vmax.f32 %v1009_v2, 0.0 }
 0x949   :  { %3043 = vrsqrt.f32 %v1016_v3  ;;  %v1015_v5 = vadd.f32 1e-12, %v1011_v4 }
 0x94b   :  { %3045 = vrsqrt.f32 %v1015_v5 }
 0x953   :  { %v3044_v7 = vpop.eup %3043 }
 0x954   :  { %v1020_v10 = vmul.f32 %v3044_v7, %v1014_v6 }
 0x955   :  { %v3046_v11 = vpop.eup %3045 }
 0x956   :  { %v1019_v12 = vmul.f32 %v3046_v11, %v1013_v9  ;;  %v1028_v13 = vmul.f32 %v2450_v8, %v1020_v10  ;;  %v2993_v9 = vld [vmem:[%s4038_s19 + $0x44] ss:$8 sps:$4 sm:$0xff]   ;;  %v2991_v10 = vld [vmem:[%s4038_s19 + $0x40] ss:$8 sps:$4 sm:$0xff]   ;;  %v2996_v11 = vld [vmem:[%s4038_s19 + $0x54] ss:$8 sps:$4 sm:$0xff]  }
 0x957   :  { %1370 = vmatprep.subr.bf16.mxu1 %v2993_v9 }
 0x958   :  { %v1027_v17 = vmul.f32 %v2450_v8, %v1019_v12  ;;  %v3722_v21 = vadd.f32 %v2451_v14, %v1028_v13  ;;  %v2994_v12 = vld [vmem:[%s4038_s19 + $0x50] ss:$8 sps:$4 sm:$0xff]   ;;  %v2999_v13 = vld [vmem:[%s4038_s19 + $0x64] ss:$8 sps:$4 sm:$0xff]  }
 0x95a   :  { %v3720_v19 = vadd.f32 %v2451_v14, %v1027_v17  ;;  %v2997_v14 = vld [vmem:[%s4038_s19 + $0x60] ss:$8 sps:$4 sm:$0xff]   ;;  %v3002_v17 = vld [vmem:[%s4038_s19 + $0x74] ss:$8 sps:$4 sm:$0xff]  }
 0x95c   :  { %v1037_v23 = vpack.c.bf16 %v3722_v21, %v3720_v19 }
 0x95e   :  { %2777 = vmatmul.mubr.msk.bf16.vlgmr.msra.gmra.mrb[28].mxu1 %vm271_vm2, %v1037_v23 }
 0x95f   :  { %1402 = vmatprep.mubr.bf16.mxu1 %v3262_v1  ;;  %v2986_v1 = vld [vmem:[%s4012_s14 + $0x18] sm:$0xff]   ;;  %1371 = vmatpush1.bf16.msra.mxu1 %v2991_v10 }
 0x960   :  { %2787 = vmatpush3.bf16.msra.mxu0 %v2986_v1  ;;  %1372 = vmatprep.subr.bf16.mxu1 %v2996_v11 }
 0x961   :  { %2788 = vmatprep.subr.bf16.mxu0 %v3264_v18 }
 0x963   :  { %1373 = vmatpush1.bf16.msra.mxu1 %v2994_v12 }
 0x964   :  { %2789 = vmatpush3.bf16.msra.mxu0 %v2987_v27  ;;  %1374 = vmatprep.subr.bf16.mxu1 %v2999_v13 }
 0x965   :  { %2790 = vmatprep.subr.bf16.mxu0 %v3264_v18 }
 0x967   :  { %1375 = vmatpush1.bf16.msra.mxu1 %v2997_v14 }
 0x968   :  { %2791 = vmatpush3.bf16.msra.mxu0 %v2988_v29  ;;  %1376 = vmatprep.subr.bf16.mxu1 %v3002_v17 }
 0x969   :  { %2792 = vmatprep.subr.bf16.mxu0 %v3264_v18 }
 0x96c   :  { %2793 = vmatpush3.bf16.msra.mxu0 %v2989_v30 }
 0x96d   :  { %2794 = vmatprep.subr.bf16.mxu0 %v3264_v18 }
 0x970   :  { %2795 = vmatpush3.bf16.msra.mxu0 %v2990_v31 }
 0x971   :  { %2812 = vmatprep.subr.bf16.mxu0 %v3264_v18 }
 0xa31   :  { %v1114_v32 = vpop.f32.mrb[28].mxu1 }
 0xa32   :  { %v1115_v34 = vadd.f32 %v2452_v28, %v1114_v32  ;;  %v2778_v35 = vpop.f32.mrb[29].mxu1 }
 0xa33   :  { %v1117_v36 = vpop.f32.mrb[30].mxu1 }
 0xa34   :  { %v1121_v37 = vmul.f32 %v1115_v34, %v1115_v34  ;;  %v1118_v38 = vadd.f32 %v2452_v28, %v1117_v36  ;;  %v2779_v39 = vpop.f32.mrb[31].mxu1 }
 0xa36   :  { %v1123_v40 = vmul.f32 %v1121_v37, %v1115_v34  ;;  %v1122_v41 = vmul.f32 %v1118_v38, %v1118_v38 }
 0xa38   :  { %v1125_v42 = vmul.f32 0.044715, %v1123_v40  ;;  %v1124_v43 = vmul.f32 %v1122_v41, %v1118_v38  ;;  %v2467_v40 = vld [vmem:[#allocation8] ss:$0 sm:$0xff] }
 0xa3a   :  { %v1127_v44 = vadd.f32 %v1125_v42, %v1115_v34  ;;  %v1126_v45 = vmul.f32 0.044715, %v1124_v43 }
 0xa3c   :  { %v1129_v46 = vmul.f32 0.7978846, %v1127_v44  ;;  %v1128_v47 = vadd.f32 %v1126_v45, %v1118_v38 }
 0xa3e   :  { %3047 = vtanh.f32 %v1129_v46  ;;  %v1130_v48 = vmul.f32 0.7978846, %v1128_v47  ;;  %v2468_v46 = vld [vmem:[#allocation10] ss:$0 sm:$0xff] }
 0xa40   :  { %3049 = vtanh.f32 %v1130_v48 }
 0xa48   :  { %v3048_v50 = vpop.eup %3047 }
 0xa49   :  { %v1133_v15 = vadd.f32 1.0, %v3048_v50 }
 0xa4a   :  { %v3050_v16 = vpop.eup %3049 }
 0xa4b   :  { %v1135_v51 = vmul.f32 0.5, %v1133_v15  ;;  %v1134_v52 = vadd.f32 1.0, %v3050_v16  ;;  %v2477_v16 = vld [vmem:[%s4005_s7 + $0x2] sm:$0x3] }
 0xa4d   :  { %v1136_v33 = vmul.f32 0.5, %v1134_v52  ;;  %v1137_v49 = vmul.f32 %v1135_v51, %v1115_v34  ;;  %v1320_v51 = vrot.slane %v2477_v16, %v3578_v20 }
 0xa4f   :  { %v1138_v53 = vmul.f32 %v1136_v33, %v1118_v38 }
 0xa51   :  { %v1139_v54 = vpack.c.bf16 %v1138_v53, %v1137_v49 }
 0xa53   :  { %2797 = vmatmul.mubr.bf16.vlgmr.msra.gmra.mrb[16].mxu0 %v1139_v54 }
 0xa54   :  { %2814 = vmatprep.mubr.msk.bf16.mxu0 %vm3266_vm4, %v3264_v18 }
 0xb26   :  { %v1245_v57 = vpop.f32.mrb[16].mxu0 }
 0xb27   :  { %v1246_v58 = vadd.f32 %v2458_v56, %v1245_v57  ;;  %v2798_v59 = vpop.f32.mrb[17].mxu0 }
 0xb28   :  { %v1248_v60 = vpop.f32.mrb[18].mxu0 }
 0xb29   :  { %v1252_v61 = vadd.f32 %v1246_v58, %v3720_v19  ;;  %v1249_v63 = vadd.f32 %v2458_v56, %v1248_v60  ;;  %v2799_v0 = vpop.f32.mrb[19].mxu0  ;;  %v3000_v19 = vld [vmem:[%s4038_s19 + $0x70] ss:$8 sps:$4 sm:$0xff]  }
 0xb2a   :  { %1377 = vmatpush1.bf16.msra.mxu1 %v3000_v19 }
 0xb2b   :  { %v1253_v2 = vadd.f32 %v1249_v63, %v3722_v21  ;;  %v1256_v3 = vsel %vm271_vm2, %v1252_v61, 0.0  ;;  %v1264_v4 = vmul.f32 %v1252_v61, %v1252_v61  ;;  %2800 = vmatprep.subr.bf16.mxu1 %v3264_v18 }
 0xb2c   :  { %1257 = vadd.xlane.f32.xlu0 %v1256_v3 }
 0xb2d   :  { %v1259_v5 = vsel %vm271_vm2, %v1253_v2, 0.0  ;;  %v1265_v6 = vmul.f32 %v1253_v2, %v1253_v2  ;;  %v1266_v7 = vsel %vm271_vm2, %v1264_v4, 0.0  ;;  %v1324_v4 = vrot.slane %v2477_v16, %v3583_v22 }
 0xb2e   :  { %1260 = vadd.xlane.f32.xlu1 %v1259_v5 }
 0xb2f   :  { %v1269_v8 = vsel %vm271_vm2, %v1265_v6, 0.0 }
 0xb30   :  { %1267 = vadd.xlane.f32.xlu0 %v1266_v7 }
 0xb32   :  { %1270 = vadd.xlane.f32.xlu1 %v1269_v8 }
 0xbb9   :  { %v1258_v21 = vpop.xlane.xlu0 %1257 }
 0xbba   :  { %v1262_v23 = vmul.f32 0.015625, %v1258_v21 }
 0xbbb   :  { %v1261_v24 = vpop.xlane.xlu1 %1260 }
 0xbbc   :  { %v1263_v25 = vmul.f32 0.015625, %v1261_v24  ;;  %v1274_v1 = vmul.f32 %v1262_v23, %v1262_v23  ;;  %v1280_v38 = vsub.f32 %v1252_v61, %v1262_v23 }
 0xbbd   :  { %v1268_v26 = vpop.xlane.xlu0 %1267 }
 0xbbe   :  { %v1272_v27 = vmul.f32 0.015625, %v1268_v26  ;;  %v1275_v30 = vmul.f32 %v1263_v25, %v1263_v25  ;;  %v1281_v41 = vsub.f32 %v1253_v2, %v1263_v25 }
 0xbbf   :  { %v1271_v29 = vpop.xlane.xlu1 %1270 }
 0xbc0   :  { %v1276_v31 = vsub.f32 %v1272_v27, %v1274_v1  ;;  %v1273_v28 = vmul.f32 0.015625, %v1271_v29 }
 0xbc2   :  { %v1278_v32 = vmax.f32 %v1276_v31, 0.0  ;;  %v1277_v34 = vsub.f32 %v1273_v28, %v1275_v30 }
 0xbc4   :  { %v1282_v35 = vadd.f32 1e-12, %v1278_v32  ;;  %v1279_v36 = vmax.f32 %v1277_v34, 0.0 }
 0xbc6   :  { %3051 = vrsqrt.f32 %v1282_v35  ;;  %v1283_v37 = vadd.f32 1e-12, %v1279_v36 }
 0xbc8   :  { %3053 = vrsqrt.f32 %v1283_v37 }
 0xbd0   :  { %v3052_v39 = vpop.eup %3051 }
 0xbd1   :  { %v1286_v42 = vmul.f32 %v3052_v39, %v1280_v38 }
 0xbd2   :  { %v3054_v43 = vpop.eup %3053 }
 0xbd3   :  { %v1287_v44 = vmul.f32 %v3054_v43, %v1281_v41  ;;  %v1294_v45 = vmul.f32 %v2467_v40, %v1286_v42 }
 0xbd5   :  { %v1295_v47 = vmul.f32 %v2467_v40, %v1287_v44  ;;  %v3796_v48 = vadd.f32 %v2468_v46, %v1294_v45 }
 0xbd7   :  { %v3798_v50 = vadd.f32 %v2468_v46, %v1295_v47 }
 0xbd9   :  { %v1304_v15 = vpack.c.bf16 %v3798_v50, %v3796_v48 }
 0xbdb   :  { %2486 = vmatmul.mubr.msk.bf16.vlgmr.msra.gmra.mrb[32].mxu1 %vm271_vm2, %v1304_v15 }
 0xbdc   :  { %2802 = vmatprep.mubr.msk.bf16.mxu1 %vm3266_vm4, %v3264_v18 }
 0xcae   :  { %v1404_v52 = vpop.f32.mrb[32].mxu1 }
 0xcaf   :  { %v1405_v33 = vadd.f32 %v1404_v52, %v1320_v51  ;;  %v1406_v49 = vpop.f32.mrb[33].mxu1 }
 0xcb0   :  { %v1408_v53 = vpop.f32.mrb[34].mxu1  ;;  %v1407_v6 = vadd.f32 %v1406_v49, %v1324_v4 }
 0xcb1   :  { %v2576_v54 = vpack.c.bf16 %v1405_v33, %v1405_v33  ;;  %v1409_v56 = vadd.f32 %v1408_v53, %v1320_v51  ;;  %v1410_v57 = vpop.f32.mrb[35].mxu1 }
 0xcb2   :  { %v1411_v9 = vadd.f32 %v1410_v57, %v1324_v4  ;;  %v3829_v11 = vpack.c.bf16 %v1407_v6, %v1407_v6 }
 0xcb3   :  { %v2577_v58 = vpack.c.bf16 %v1409_v56, %v1409_v56  ;;  %1420 = vrot.lane.b32.xlu0 %v2576_v54, %s3265_s20 }
 0xcb4   :  { %v3832_v12 = vpack.c.bf16 %v1411_v9, %v1411_v9  ;;  %v1681_v22 = vsel %vm709_vm3, %v3829_v11, 0 }
 0xcb5   :  { %1422 = vrot.lane.b32.xlu1 %v2577_v58, %s3265_s20 }
 0xcb6   :  { %v1727_v13 = vsel %vm709_vm3, %v3832_v12, 0 }
 0xcb7   :  { %1481 = vrot.lane.b32.xlu0 %v2577_v58, %s3267_s17 }
 0xcb9   :  { %1433 = vrot.lane.b32.xlu1 %v2576_v54, %s3267_s17 }
 0xd25   :  { %v1421_v59 = vpop.permute.xlu0 %1420 }
 0xd26   :  { %v2493_v60 = vcombine.low %v1421_v59, %v1421_v59 }
 0xd27   :  { %v1423_v61 = vpop.permute.xlu1 %1422 }
 0xd28   :  { %v2495_v20 = vcombine.low %v1423_v61, %v1423_v61  ;;  %1531 = vrot.lane.b32.xlu1 %v2493_v60, %s3267_s17 }
 0xd29   :  { %v1482_v2 = vpop.permute.xlu0 %1481 }
 0xd2a   :  { %1581 = vrot.lane.b32.xlu0 %v2495_v20, %s3267_s17  ;;  %v1487_v3 = vsel %vm462_vm5, %v1482_v2, 0 }
 0xd2b   :  { %v1434_v63 = vpop.permute.xlu1 %1433 }
 0xd2c   :  { %v1439_v0 = vsel %vm462_vm5, %v1434_v63, 0 }
 0xd2d   :  { %2801 = vmatpush3.bf16.xpose.msra.mxu1 %v1439_v0 }
 0xd2e   :  { %2806 = vmatprep.subr.bf16.mxu1 %v3264_v18 }
 0xd34   :  { %2803 = vmatmul.mubr.msk.bf16.vlgmr.msra.gmra.mrb[36].mxu1 %vm462_vm5, %v2576_v54 }
 0xd35   :  { %2807 = vmatpush3.bf16.xpose.msra.mxu1 %v1487_v3  ;;  %2808 = vmatprep.mubr.msk.bf16.mxu1 %vm3266_vm4, %v3264_v18 }
 0xd36   :  { %2818 = vmatprep.subr.bf16.mxu1 %v3264_v18 }
 0xd3c   :  { %2809 = vmatmul.mubr.msk.bf16.vlgmr.msra.gmra.mrb[40].mxu1 %vm462_vm5, %v2577_v58 }
 0xd3d   :  { %2820 = vmatprep.mubr.msk.bf16.mxu1 %vm3266_vm4, %v3264_v18 }
 0xd9a   :  { %v1532_v5 = vpop.permute.xlu1 %1531 }
 0xd9b   :  { %v1537_v7 = vsel %vm462_vm5, %v1532_v5, 0 }
 0xd9c   :  { %2813 = vmatpush3.bf16.xpose.msra.mxu0 %v1537_v7  ;;  %v1582_v8 = vpop.permute.xlu0 %1581 }
 0xd9d   :  { %v1587_v10 = vsel %vm462_vm5, %v1582_v8, 0  ;;  %2824 = vmatprep.subr.bf16.mxu0 %v3264_v18 }
 0xd9e   :  { %2819 = vmatpush3.bf16.xpose.msra.mxu1 %v1587_v10 }
 0xd9f   :  { %2830 = vmatprep.subr.bf16.mxu1 %v3264_v18 }
 0xda3   :  { %2815 = vmatmul.mubr.msk.bf16.vlgmr.msra.gmra.mrb[20].mxu0 %vm462_vm5, %v1421_v59 }
 0xda4   :  { %2825 = vmatpush3.bf16.msra.mxu0 %v1681_v22  ;;  %2826 = vmatprep.mubr.msk.bf16.mxu0 %vm3266_vm4, %v3264_v18 }
 0xda5   :  { %2821 = vmatmul.mubr.msk.bf16.vlgmr.msra.gmra.mrb[44].mxu1 %vm462_vm5, %v1423_v61  ;;  %2836 = vmatprep.subr.bf16.mxu0 %v3264_v18 }
 0xda6   :  { %2831 = vmatpush3.bf16.msra.mxu1 %v1727_v13  ;;  %2832 = vmatprep.mubr.msk.bf16.mxu1 %vm3266_vm4, %v3264_v18 }
 0xda7   :  { %2842 = vmatprep.subr.bf16.mxu1 %v3264_v18 }
 0xe07   :  { %v1475_v14 = vpop.f32.mrb[36].mxu1 }
 0xe08   :  { %v1476_v17 = vadd.f32 %v1475_v14, %v3631_v55  ;;  %v2804_v19 = vpop.f32.mrb[37].mxu1 }
 0xe09   :  { %v1478_v21 = vpop.f32.mrb[38].mxu1 }
 0xe0a   :  { %v2805_v23 = vpop.f32.mrb[39].mxu1  ;;  %v1629_v24 = vsel %vm657_vm6, %v1476_v17, -inf  ;;  %v3003_v21 = vld [vmem:[%s4006_s8 + $0x20] sm:$0xff]  }
 0xe0b   :  { %1630 = vmax.xlane.f32.xlu1 %v1629_v24  ;;  %v3004_v23 = vld [vmem:[%s4006_s8 + $0x28] sm:$0xff]   ;;  %v3005_v24 = vld [vmem:[%s4006_s8 + $0x30] sm:$0xff]  }
 0xe0f   :  { %v1523_v25 = vpop.f32.mrb[40].mxu1 }
 0xe10   :  { %v1524_v26 = vadd.f32 %v1523_v25, %v3636_v62  ;;  %v2810_v1 = vpop.f32.mrb[41].mxu1 }
 0xe11   :  { %v1526_v27 = vpop.f32.mrb[42].mxu1 }
 0xe12   :  { %v2811_v29 = vpop.f32.mrb[43].mxu1  ;;  %v1632_v30 = vsel %vm657_vm6, %v1524_v26, -inf }
 0xe13   :  { %1633 = vmax.xlane.f32.xlu0 %v1632_v30 }
 0xe76   :  { %v1573_v31 = vpop.f32.mrb[20].mxu0 }
 0xe77   :  { %v1574_v28 = vadd.f32 %v1573_v31, %v3631_v55  ;;  %v2816_v32 = vpop.f32.mrb[21].mxu0 }
 0xe78   :  { %v1576_v34 = vpop.f32.mrb[22].mxu0  ;;  %v1623_v35 = vpop.f32.mrb[44].mxu1  ;;  %v3006_v32 = vld [vmem:[%s4006_s8 + $0x38] sm:$0xff]  }
 0xe79   :  { %v1624_v36 = vadd.f32 %v1623_v35, %v3636_v62  ;;  %v2817_v37 = vpop.f32.mrb[23].mxu0  ;;  %v2822_v38 = vpop.f32.mrb[45].mxu1  ;;  %v1635_v39 = vsel %vm657_vm6, %v1574_v28, -inf }
 0xe7a   :  { %v1626_v40 = vpop.f32.mrb[46].mxu1  ;;  %1636 = vmax.xlane.f32.xlu0 %v1635_v39 }
 0xe7b   :  { %v2823_v41 = vpop.f32.mrb[47].mxu1  ;;  %v1638_v42 = vsel %vm657_vm6, %v1624_v36, -inf }
 0xe7c   :  { %1639 = vmax.xlane.f32.xlu1 %v1638_v42 }
 0xe98   :  { %v1631_v43 = vpop.xlane.xlu1 %1630 }
 0xe99   :  { %v1641_v44 = vsub.f32 %v1476_v17, %v1631_v43 }
 0xe9b   :  { %v1645_v45 = vmul.f32 1.442695, %v1641_v44 }
 0xe9d   :  { %3055 = vpow2.f32 %v1645_v45 }
 0xea0   :  { %v1634_v55 = vpop.xlane.xlu0 %1633 }
 0xea1   :  { %v1642_v46 = vsub.f32 %v1524_v26, %v1634_v55 }
 0xea3   :  { %v1647_v47 = vmul.f32 1.442695, %v1642_v46 }
 0xea5   :  { %3057 = vpow2.f32 %v1647_v47 }
 0xea7   :  { %v3056_v15 = vpop.eup %3055 }
 0xea8   :  { %v1653_v62 = vsel %vm657_vm6, %v3056_v15, 0.0 }
 0xea9   :  { %1654 = vadd.xlane.f32.xlu0 %v1653_v62 }
 0xeaf   :  { %v3058_v16 = vpop.eup %3057 }
 0xeb0   :  { %v1656_v51 = vsel %vm657_vm6, %v3058_v16, 0.0 }
 0xeb1   :  { %1657 = vadd.xlane.f32.xlu1 %v1656_v51 }
 0xf07   :  { %v1637_v52 = vpop.xlane.xlu0 %1636 }
 0xf08   :  { %v1643_v33 = vsub.f32 %v1574_v28, %v1637_v52 }
 0xf09   :  { %v1640_v49 = vpop.xlane.xlu1 %1639 }
 0xf0a   :  { %v1649_v53 = vmul.f32 1.442695, %v1643_v33  ;;  %v1644_v54 = vsub.f32 %v1624_v36, %v1640_v49 }
 0xf0c   :  { %3059 = vpow2.f32 %v1649_v53  ;;  %v1651_v56 = vmul.f32 1.442695, %v1644_v54 }
 0xf0e   :  { %3061 = vpow2.f32 %v1651_v56 }
 0xf16   :  { %v3060_v57 = vpop.eup %3059 }
 0xf17   :  { %v1659_v58 = vsel %vm657_vm6, %v3060_v57, 0.0 }
 0xf18   :  { %v3062_v59 = vpop.eup %3061  ;;  %1660 = vadd.xlane.f32.xlu0 %v1659_v58 }
 0xf19   :  { %v1662_v60 = vsel %vm657_vm6, %v3062_v59, 0.0 }
 0xf1a   :  { %1663 = vadd.xlane.f32.xlu1 %v1662_v60 }
 0xf2b   :  { %1431 = vrot.lane.b32.xlu1 %v3832_v12, %s3265_s20 }
 0xf2e   :  { %1429 = vrot.lane.b32.xlu0 %v3829_v11, %s3265_s20 }
 0xf36   :  { %v1655_v61 = vpop.xlane.xlu0 %1654 }
 0xf37   :  { %3063 = vrcp.f32 %v1655_v61 }
 0xf3e   :  { %v1658_v20 = vpop.xlane.xlu1 %1657 }
 0xf3f   :  { %3065 = vrcp.f32 %v1658_v20  ;;  %v3009_v20 = vld [vmem:[%s4010_s12 + $0x30] sm:$0xff]  }
 0xf41   :  { %v3064_v63 = vpop.eup %3063 }
 0xf42   :  { %v1669_v0 = vmul.f32 %v3064_v63, %v3056_v15  ;;  %v2510_v15 = vld [vmem:[%s4007_s9 + $0x1] ss:$0 sm:$0xff]  ;;  %v3010_v63 = vld [vmem:[%s4010_s12 + $0x38] sm:$0xff]  }
 0xf44   :  { %v1673_v2 = vpack.c.bf16 %v1669_v0, %v1669_v0 }
 0xf46   :  { %2827 = vmatmul.mubr.msk.bf16.vlgmr.msra.gmra.mrb[24].mxu0 %vm657_vm6, %v1673_v2 }
 0xf47   :  { %2838 = vmatprep.mubr.msk.bf16.mxu0 %vm3266_vm4, %v3264_v18 }
 0xf49   :  { %v3066_v3 = vpop.eup %3065 }
 0xf4a   :  { %v1670_v4 = vmul.f32 %v3066_v3, %v3058_v16 }
 0xf4c   :  { %v1674_v5 = vpack.c.bf16 %v1670_v4, %v1670_v4 }
 0xf4e   :  { %2833 = vmatmul.mubr.msk.bf16.vlgmr.msra.gmra.mrb[48].mxu1 %vm657_vm6, %v1674_v5 }
 0xf4f   :  { %2844 = vmatprep.mubr.msk.bf16.mxu1 %vm3266_vm4, %v3264_v18 }
 0xfa5   :  { %v1661_v6 = vpop.xlane.xlu0 %1660 }
 0xfa6   :  { %3067 = vrcp.f32 %v1661_v6 }
 0xfa7   :  { %v1664_v7 = vpop.xlane.xlu1 %1663 }
 0xfa8   :  { %3069 = vrcp.f32 %v1664_v7 }
 0xfa9   :  { %v1430_v8 = vpop.permute.xlu0 %1429 }
 0xfaa   :  { %v1773_v9 = vsel %vm709_vm3, %v1430_v8, 0 }
 0xfab   :  { %v1432_v10 = vpop.permute.xlu1 %1431  ;;  %2837 = vmatpush3.bf16.msra.mxu0 %v1773_v9 }
 0xfac   :  { %v1819_v11 = vsel %vm709_vm3, %v1432_v10, 0  ;;  %2848 = vmatprep.subr.bf16.mxu0 %v3264_v18 }
 0xfad   :  { %2843 = vmatpush3.bf16.msra.mxu1 %v1819_v11 }
 0xfae   :  { %2860 = vmatprep.subr.bf16.mxu1 %v3264_v18 }
 0xfb0   :  { %v3068_v12 = vpop.eup %3067 }
 0xfb1   :  { %v1671_v22 = vmul.f32 %v3068_v12, %v3060_v57 }
 0xfb2   :  { %v3070_v13 = vpop.eup %3069 }
 0xfb3   :  { %v1672_v14 = vmul.f32 %v3070_v13, %v3062_v59  ;;  %v1675_v17 = vpack.c.bf16 %v1671_v22, %v1671_v22 }
 0xfb5   :  { %2839 = vmatmul.mubr.msk.bf16.vlgmr.msra.gmra.mrb[28].mxu0 %vm657_vm6, %v1675_v17  ;;  %v1676_v19 = vpack.c.bf16 %v1672_v14, %v1672_v14 }
 0xfb6   :  { %2856 = vmatprep.mubr.msk.bf16.mxu0 %vm3266_vm4, %v3264_v18  ;;  %2849 = vmatpush3.bf16.msra.mxu0 %v3003_v21 }
 0xfb7   :  { %2845 = vmatmul.mubr.msk.bf16.vlgmr.msra.gmra.mrb[52].mxu1 %vm657_vm6, %v1676_v19  ;;  %2850 = vmatprep.subr.bf16.mxu0 %v3264_v18 }
 0xfb8   :  { %2868 = vmatprep.mubr.msk.bf16.mxu1 %vm3266_vm4, %v3264_v18 }
 0xfba   :  { %2851 = vmatpush3.bf16.msra.mxu0 %v3004_v23 }
 0xfbb   :  { %2852 = vmatprep.subr.bf16.mxu0 %v3264_v18 }
 0xfbe   :  { %2853 = vmatpush3.bf16.msra.mxu0 %v3005_v24  ;;  %v2518_v24 = vld [vmem:[%s4008_s10 + $0x1] ss:$0 sm:$0xff] }
 0xfbf   :  { %2854 = vmatprep.subr.bf16.mxu0 %v3264_v18 }
 0xfc2   :  { %2855 = vmatpush3.bf16.msra.mxu0 %v3006_v32 }
 0xfc3   :  { %2872 = vmatprep.subr.bf16.mxu0 %v3264_v18 }
0x1019   :  { %v1717_v25 = vpop.f32.mrb[24].mxu0 }
0x101a   :  { %v2828_v26 = vpop.f32.mrb[25].mxu0 }
0x101b   :  { %v1720_v1 = vpop.f32.mrb[26].mxu0 }
0x101c   :  { %v2829_v27 = vpop.f32.mrb[27].mxu0 }
0x1021   :  { %v1763_v29 = vpop.f32.mrb[48].mxu1 }
0x1022   :  { %v2834_v30 = vpop.f32.mrb[49].mxu1 }
0x1023   :  { %v1766_v31 = vpop.f32.mrb[50].mxu1 }
0x1024   :  { %v2835_v28 = vpop.f32.mrb[51].mxu1 }
0x1088   :  { %v1809_v34 = vpop.f32.mrb[28].mxu0 }
0x1089   :  { %v2840_v35 = vpop.f32.mrb[29].mxu0 }
0x108a   :  { %v1812_v36 = vpop.f32.mrb[30].mxu0  ;;  %v1855_v37 = vpop.f32.mrb[52].mxu1  ;;  %v3012_v35 = vld [vmem:[%s4012_s14 + $0x48] sm:$0xff]  }
0x108b   :  { %v2958_v38 = vpack.i.bf16 %v1855_v37, %v1809_v34  ;;  %v2841_v39 = vpop.f32.mrb[31].mxu0  ;;  %v2846_v40 = vpop.f32.mrb[53].mxu1  ;;  %v3011_v34 = vld [vmem:[%s4012_s14 + $0x40] sm:$0xff]   ;;  %v3013_v36 = vld [vmem:[%s4012_s14 + $0x50] sm:$0xff]   ;;  %v3014_v37 = vld [vmem:[%s4012_s14 + $0x58] sm:$0xff]  }
0x108c   :  { %v1858_v41 = vpop.f32.mrb[54].mxu1  ;;  %v3016_v39 = vld [vmem:[%s4012_s14 + $0x68] sm:$0xff]   ;;  %v3017_v40 = vld [vmem:[%s4012_s14 + $0x70] sm:$0xff]  }
0x108d   :  { %v2847_v42 = vpop.f32.mrb[55].mxu1  ;;  %2959 = vrot.lane.b32.xlu1 %v2958_v38, %s3268_s1  ;;  %v3015_v38 = vld [vmem:[%s4012_s14 + $0x60] sm:$0xff]   ;;  %v3018_v41 = vld [vmem:[%s4012_s14 + $0x78] sm:$0xff]  }
0x108e   :  { %v2529_v42 = vld [vmem:[%s4011_s13 + $0x1] ss:$0 sm:$0xff] }
0x10ff   :  { %v2960_v43 = vpop.permute.xlu1 %2959 }
0x1100   :  { %v2962_v44 = vunpack.i.h.bf16 %v2960_v43  ;;  %v2961_v45 = vunpack.i.l.bf16 %v2960_v43 }
0x1102   :  { %v1870_v55 = vsel %vm462_vm5, %v1763_v29, %v2962_v44  ;;  %v1869_v46 = vsel %vm462_vm5, %v1717_v25, %v2961_v45  ;;  %v2519_v29 = vld [vmem:[%s4009_s11 + $0x1] ss:$0 sm:$0xff] }
0x1103   :  { %v1871_v47 = vpack.c.bf16 %v1870_v55, %v1869_v46 }
0x1105   :  { %2857 = vmatmul.mubr.msk.bf16.vlgmr.msra.gmra.mrb[32].mxu0 %vm271_vm2, %v1871_v47 }
0x1106   :  { %2888 = vmatprep.mubr.msk.bf16.mxu0 %vm3266_vm4, %v3264_v18  ;;  %2873 = vmatpush3.bf16.msra.mxu0 %v3011_v34 }
0x1107   :  { %2874 = vmatprep.subr.bf16.mxu0 %v3264_v18 }
0x110a   :  { %2875 = vmatpush3.bf16.msra.mxu0 %v3012_v35 }
0x110b   :  { %2876 = vmatprep.subr.bf16.mxu0 %v3264_v18 }
0x110e   :  { %2877 = vmatpush3.bf16.msra.mxu0 %v3013_v36 }
0x110f   :  { %2878 = vmatprep.subr.bf16.mxu0 %v3264_v18 }
0x1112   :  { %2879 = vmatpush3.bf16.msra.mxu0 %v3014_v37 }
0x1113   :  { %2880 = vmatprep.subr.bf16.mxu0 %v3264_v18 }
0x1116   :  { %2881 = vmatpush3.bf16.msra.mxu0 %v3015_v38 }
0x1117   :  { %2882 = vmatprep.subr.bf16.mxu0 %v3264_v18 }
0x111a   :  { %2883 = vmatpush3.bf16.msra.mxu0 %v3016_v39 }
0x111b   :  { %2884 = vmatprep.subr.bf16.mxu0 %v3264_v18 }
0x111e   :  { %2885 = vmatpush3.bf16.msra.mxu0 %v3017_v40 }
0x111f   :  { %2886 = vmatprep.subr.bf16.mxu0 %v3264_v18 }
0x1122   :  { %2887 = vmatpush3.bf16.msra.mxu0 %v3018_v41  ;;  %v2560_v41 = vld [vmem:[#allocation8 + $0x1] ss:$0 sm:$0xff] }
0x11d8   :  { %v1950_v62 = vpop.f32.mrb[32].mxu0 }
0x11d9   :  { %v1951_v16 = vadd.f32 %v2510_v15, %v1950_v62  ;;  %v2858_v51 = vpop.f32.mrb[33].mxu0 }
0x11da   :  { %v1953_v52 = vpop.f32.mrb[34].mxu0 }
0x11db   :  { %v1957_v33 = vadd.f32 %v1951_v16, %v3796_v48  ;;  %v1954_v49 = vadd.f32 %v2510_v15, %v1953_v52  ;;  %v2859_v53 = vpop.f32.mrb[35].mxu0  ;;  %v3007_v48 = vld [vmem:[%s4010_s12 + $0x20] sm:$0xff]  }
0x11dc   :  { %2861 = vmatpush3.bf16.msra.mxu1 %v3007_v48 }
0x11dd   :  { %v1958_v54 = vadd.f32 %v1954_v49, %v3798_v50  ;;  %v1963_v56 = vsel %vm271_vm2, %v1957_v33, 0.0  ;;  %v1971_v57 = vmul.f32 %v1957_v33, %v1957_v33  ;;  %2862 = vmatprep.subr.bf16.mxu1 %v3264_v18  ;;  %v3008_v50 = vld [vmem:[%s4010_s12 + $0x28] sm:$0xff]  }
0x11de   :  { %1964 = vadd.xlane.f32.xlu0 %v1963_v56 }
0x11df   :  { %v1966_v58 = vsel %vm271_vm2, %v1958_v54, 0.0  ;;  %v1973_v59 = vsel %vm271_vm2, %v1971_v57, 0.0  ;;  %v1972_v60 = vmul.f32 %v1958_v54, %v1958_v54 }
0x11e0   :  { %1967 = vadd.xlane.f32.xlu1 %v1966_v58  ;;  %2863 = vmatpush3.bf16.msra.mxu1 %v3008_v50 }
0x11e1   :  { %v1976_v61 = vsel %vm271_vm2, %v1972_v60, 0.0  ;;  %2864 = vmatprep.subr.bf16.mxu1 %v3264_v18 }
0x11e2   :  { %1974 = vadd.xlane.f32.xlu0 %v1973_v59 }
0x11e4   :  { %2865 = vmatpush3.bf16.msra.mxu1 %v3009_v20 }
0x11e5   :  { %2866 = vmatprep.subr.bf16.mxu1 %v3264_v18 }
0x11e6   :  { %1977 = vadd.xlane.f32.xlu0 %v1976_v61 }
0x11e8   :  { %2867 = vmatpush3.bf16.msra.mxu1 %v3010_v63 }
0x11e9   :  { %2892 = vmatprep.subr.bf16.mxu1 %v3264_v18 }
0x126b   :  { %v1965_v0 = vpop.xlane.xlu0 %1964 }
0x126c   :  { %v1969_v2 = vmul.f32 0.015625, %v1965_v0  ;;  %v2551_v0 = vld [vmem:[#allocation7 + $0x1] ss:$0 sm:$0xff] }
0x126d   :  { %v1968_v3 = vpop.xlane.xlu1 %1967 }
0x126e   :  { %v1981_v5 = vmul.f32 %v1969_v2, %v1969_v2  ;;  %v1970_v6 = vmul.f32 0.015625, %v1968_v3  ;;  %v1987_v19 = vsub.f32 %v1957_v33, %v1969_v2 }
0x126f   :  { %v1975_v4 = vpop.xlane.xlu0 %1974 }
0x1270   :  { %v1979_v7 = vmul.f32 0.015625, %v1975_v4  ;;  %v1982_v10 = vmul.f32 %v1970_v6, %v1970_v6  ;;  %v1988_v25 = vsub.f32 %v1958_v54, %v1970_v6 }
0x1272   :  { %v1983_v8 = vsub.f32 %v1979_v7, %v1981_v5 }
0x1273   :  { %v1978_v9 = vpop.xlane.xlu0 %1977 }
0x1274   :  { %v1985_v11 = vmax.f32 %v1983_v8, 0.0  ;;  %v1980_v12 = vmul.f32 0.015625, %v1978_v9 }
0x1276   :  { %v1989_v22 = vadd.f32 1e-12, %v1985_v11  ;;  %v1984_v13 = vsub.f32 %v1980_v12, %v1982_v10 }
0x1278   :  { %3071 = vrsqrt.f32 %v1989_v22  ;;  %v1986_v14 = vmax.f32 %v1984_v13, 0.0 }
0x127a   :  { %v1990_v17 = vadd.f32 1e-12, %v1986_v14 }
0x127c   :  { %3073 = vrsqrt.f32 %v1990_v17  ;;  %v3019_v17 = vld [vmem:[%s4016_s18] sm:$0xff]  }
0x1282   :  { %v3072_v21 = vpop.eup %3071 }
0x1283   :  { %v1993_v23 = vmul.f32 %v3072_v21, %v1987_v19  ;;  %v3020_v19 = vld [vmem:[%s4016_s18 + $0x8] sm:$0xff]   ;;  %v3021_v21 = vld [vmem:[%s4016_s18 + $0x10] sm:$0xff]  }
0x1285   :  { %v2001_v27 = vmul.f32 %v2518_v24, %v1993_v23  ;;  %v3022_v23 = vld [vmem:[%s4016_s18 + $0x18] sm:$0xff]  }
0x1286   :  { %v3074_v26 = vpop.eup %3073 }
0x1287   :  { %v1994_v1 = vmul.f32 %v3074_v26, %v1988_v25  ;;  %v2009_v31 = vadd.f32 %v2519_v29, %v2001_v27 }
0x1289   :  { %v2002_v30 = vmul.f32 %v2518_v24, %v1994_v1 }
0x128b   :  { %v3931_v28 = vadd.f32 %v2519_v29, %v2002_v30 }
0x128d   :  { %v2011_v32 = vpack.c.bf16 %v3931_v28, %v2009_v31 }
0x128f   :  { %2869 = vmatmul.mubr.msk.bf16.vlgmr.msra.gmra.mrb[56].mxu1 %vm271_vm2, %v2011_v32 }
0x1290   :  { %2900 = vmatprep.mubr.msk.bf16.mxu1 %vm3266_vm4, %v3264_v18  ;;  %2893 = vmatpush3.bf16.msra.mxu1 %v3019_v17 }
0x1291   :  { %2894 = vmatprep.subr.bf16.mxu1 %v3264_v18 }
0x1294   :  { %2895 = vmatpush3.bf16.msra.mxu1 %v3020_v19 }
0x1295   :  { %2896 = vmatprep.subr.bf16.mxu1 %v3264_v18 }
0x1298   :  { %2897 = vmatpush3.bf16.msra.mxu1 %v3021_v21 }
0x1299   :  { %2898 = vmatprep.subr.bf16.mxu1 %v3264_v18 }
0x129c   :  { %2899 = vmatpush3.bf16.msra.mxu1 %v3022_v23 }
0x1362   :  { %v2090_v43 = vpop.f32.mrb[56].mxu1 }
0x1363   :  { %v2091_v44 = vadd.f32 %v2529_v42, %v2090_v43  ;;  %v2870_v45 = vpop.f32.mrb[57].mxu1 }
0x1364   :  { %v2093_v55 = vpop.f32.mrb[58].mxu1 }
0x1365   :  { %v2097_v46 = vmul.f32 %v2091_v44, %v2091_v44  ;;  %v2094_v47 = vadd.f32 %v2529_v42, %v2093_v55  ;;  %v2871_v15 = vpop.f32.mrb[59].mxu1 }
0x1367   :  { %v2099_v62 = vmul.f32 %v2097_v46, %v2091_v44  ;;  %v2098_v16 = vmul.f32 %v2094_v47, %v2094_v47  ;;  %v2561_v46 = vld [vmem:[#allocation10 + $0x1] ss:$0 sm:$0xff] }
0x1369   :  { %v2101_v51 = vmul.f32 0.044715, %v2099_v62  ;;  %v2100_v52 = vmul.f32 %v2098_v16, %v2094_v47 }
0x136b   :  { %v2103_v33 = vadd.f32 %v2101_v51, %v2091_v44  ;;  %v2102_v49 = vmul.f32 0.044715, %v2100_v52  ;;  %v2562_v51 = vld [vmem:[#allocation11] ss:$0 sm:$0xff] }
0x136d   :  { %v2105_v53 = vmul.f32 0.7978846, %v2103_v33  ;;  %v2104_v54 = vadd.f32 %v2102_v49, %v2094_v47 }
0x136f   :  { %3075 = vtanh.f32 %v2105_v53  ;;  %v2106_v56 = vmul.f32 0.7978846, %v2104_v54  ;;  %v2568_v54 = vld [vmem:[#allocation13] ss:$0 sm:$0xff] }
0x1371   :  { %3077 = vtanh.f32 %v2106_v56 }
0x1379   :  { %v3076_v57 = vpop.eup %3075 }
0x137a   :  { %v2109_v58 = vadd.f32 1.0, %v3076_v57 }
0x137b   :  { %v3078_v59 = vpop.eup %3077 }
0x137c   :  { %v2111_v60 = vmul.f32 0.5, %v2109_v58  ;;  %v2110_v61 = vadd.f32 1.0, %v3078_v59 }
0x137e   :  { %v2112_v48 = vmul.f32 0.5, %v2110_v61  ;;  %v2113_v50 = vmul.f32 %v2111_v60, %v2091_v44 }
0x1380   :  { %v2114_v20 = vmul.f32 %v2112_v48, %v2094_v47  ;;  %v2569_v48 = vld [vmem:[#allocation2] ss:$0 sm:$0xff] }
0x1382   :  { %v2115_v63 = vpack.c.bf16 %v2114_v20, %v2113_v50 }
0x1384   :  { %2889 = vmatmul.mubr.bf16.vlgmr.msra.gmra.mrb[36].mxu0 %v2115_v63 }
0x1457   :  { %v2223_v2 = vpop.f32.mrb[36].mxu0 }
0x1458   :  { %v2224_v3 = vadd.f32 %v2551_v0, %v2223_v2  ;;  %v2890_v4 = vpop.f32.mrb[37].mxu0 }
0x1459   :  { %v2226_v5 = vpop.f32.mrb[38].mxu0 }
0x145a   :  { %v2230_v6 = vadd.f32 %v2224_v3, %v2009_v31  ;;  %v2227_v7 = vadd.f32 %v2551_v0, %v2226_v5  ;;  %v2891_v8 = vpop.f32.mrb[39].mxu0 }
0x145c   :  { %v2231_v9 = vadd.f32 %v2227_v7, %v3931_v28  ;;  %v2236_v10 = vsel %vm271_vm2, %v2230_v6, 0.0  ;;  %v2244_v11 = vmul.f32 %v2230_v6, %v2230_v6 }
0x145d   :  { %2237 = vadd.xlane.f32.xlu1 %v2236_v10 }
0x145e   :  { %v2239_v12 = vsel %vm271_vm2, %v2231_v9, 0.0  ;;  %v2245_v22 = vmul.f32 %v2231_v9, %v2231_v9  ;;  %v2246_v13 = vsel %vm271_vm2, %v2244_v11, 0.0 }
0x145f   :  { %2240 = vadd.xlane.f32.xlu0 %v2239_v12 }
0x1460   :  { %v2249_v14 = vsel %vm271_vm2, %v2245_v22, 0.0 }
0x1461   :  { %2247 = vadd.xlane.f32.xlu1 %v2246_v13 }
0x1463   :  { %2250 = vadd.xlane.f32.xlu0 %v2249_v14 }
0x14ea   :  { %v2238_v24 = vpop.xlane.xlu1 %2237 }
0x14eb   :  { %v2242_v25 = vmul.f32 0.015625, %v2238_v24 }
0x14ec   :  { %v2241_v26 = vpop.xlane.xlu0 %2240 }
0x14ed   :  { %v2243_v1 = vmul.f32 0.015625, %v2241_v26  ;;  %v2254_v29 = vmul.f32 %v2242_v25, %v2242_v25  ;;  %v2260_v18 = vsub.f32 %v2230_v6, %v2242_v25 }
0x14ee   :  { %v2248_v27 = vpop.xlane.xlu1 %2247 }
0x14ef   :  { %v2252_v30 = vmul.f32 0.015625, %v2248_v27  ;;  %v2255_v28 = vmul.f32 %v2243_v1, %v2243_v1  ;;  %v2261_v42 = vsub.f32 %v2231_v9, %v2243_v1 }
0x14f0   :  { %v2251_v31 = vpop.xlane.xlu0 %2250 }
0x14f1   :  { %v2256_v32 = vsub.f32 %v2252_v30, %v2254_v29  ;;  %v2253_v34 = vmul.f32 0.015625, %v2251_v31 }
0x14f3   :  { %v2258_v35 = vmax.f32 %v2256_v32, 0.0  ;;  %v2257_v36 = vsub.f32 %v2253_v34, %v2255_v28 }
0x14f5   :  { %v2262_v37 = vadd.f32 1e-12, %v2258_v35  ;;  %v2259_v38 = vmax.f32 %v2257_v36, 0.0 }
0x14f7   :  { %3079 = vrsqrt.f32 %v2262_v37  ;;  %v2263_v39 = vadd.f32 1e-12, %v2259_v38 }
0x14f9   :  { %3081 = vrsqrt.f32 %v2263_v39 }
0x1501   :  { %v3080_v40 = vpop.eup %3079 }
0x1502   :  { %v2266_v43 = vmul.f32 %v3080_v40, %v2260_v18 }
0x1503   :  { %v3082_v44 = vpop.eup %3081 }
0x1504   :  { %v2267_v45 = vmul.f32 %v3082_v44, %v2261_v42  ;;  %v2274_v55 = vmul.f32 %v2560_v41, %v2266_v43 }
0x1506   :  { %v2275_v47 = vmul.f32 %v2560_v41, %v2267_v45  ;;  %v2282_v15 = vadd.f32 %v2561_v46, %v2274_v55 }
0x1508   :  { %v2283_v62 = vadd.f32 %v2561_v46, %v2275_v47 }
0x150a   :  { %v2284_v16 = vpack.c.bf16 %v2283_v62, %v2282_v15 }
0x150c   :  { %2901 = vmatmul.mubr.msk.bf16.vlgmr.msra.gmra.mrb[60].mxu1 %vm271_vm2, %v2284_v16 }
0x15df   :  { %v2361_v52 = vpop.f32.mrb[60].mxu1 }
0x15e0   :  { %v2362_v33 = vadd.f32 %v2562_v51, %v2361_v52  ;;  %v2902_v49 = vpop.f32.mrb[61].mxu1 }
0x15e1   :  { %v2364_v53 = vpop.f32.mrb[62].mxu1 }
0x15e2   :  { %v2368_v56 = vmax.f32 %v2362_v33, 0.0  ;;  %v2365_v57 = vadd.f32 %v2562_v51, %v2364_v53  ;;  %v2903_v58 = vpop.f32.mrb[63].mxu1 }
0x15e4   :  { %v2369_v59 = vmax.f32 %v2365_v57, 0.0  ;;  %v2377_v60 = vmul.f32 %v2568_v54, %v2368_v56 }
0x15e6   :  { %2379 = vadd.xlane.f32.xlu1 %v2377_v60  ;;  %v2378_v61 = vmul.f32 %v2568_v54, %v2369_v59 }
0x15e8   :  { %2381 = vadd.xlane.f32.xlu0 %v2378_v61 }
0x1673   :  { %v2380_v50 = vpop.xlane.xlu1 %2379 }
0x1674   :  { %v2390_v20 = vadd.f32 %v2569_v48, %v2380_v50 }
0x1675   :  { %v2382_v63 = vpop.xlane.xlu0 %2381 }
0x1676   :  { %v2570_v0 = vmul.f32 -1.442695, %v2390_v20  ;;  %v2391_v2 = vadd.f32 %v2569_v48, %v2382_v63 }
0x1678   :  { %3083 = vpow2.f32 %v2570_v0  ;;  %v2571_v3 = vmul.f32 -1.442695, %v2391_v2 }
0x167a   :  { %3085 = vpow2.f32 %v2571_v3 }
0x1682   :  { %v3084_v4 = vpop.eup %3083 }
0x1683   :  { %v2398_v5 = vadd.f32 1.0, %v3084_v4 }
0x1684   :  { %v3086_v6 = vpop.eup %3085 }
0x1685   :  { %3087 = vrcp.f32 %v2398_v5  ;;  %v2399_v7 = vadd.f32 1.0, %v3086_v6 }
0x1687   :  { %3089 = vrcp.f32 %v2399_v7 }
0x168f   :  { %v3088_v8 = vpop.eup %3087 }
0x1690   :  { %2405 = vst.msk [vmem:[%s4020_s22] sm:$0xff] %vm2404_vm7, %v3088_v8 }
0x1691   :  { %v3090_v9 = vpop.eup %3089 }
0x1692   :  { %2406 = vst.msk [vmem:[%s4020_s22 + $0x8] sm:$0xff] %vm2404_vm7, %v3090_v9 }
0x1693   :  { %2411 = vsyncpa [#allocation4], 1 }
0x1694   :  { %2412 = vsyncpa [#allocation6], 1 }
0x1695   :  { %2413 = vsyncpa [#allocation9], 1 }
0x1696   :  { %2414 = vsyncpa [#allocation12], 1 }

</bundles_post_ra>
